<compile_context>
chip_gen: v5e
topology: v5e:2x2
jax: 0.10.0
libtpu: 0.0.40
codegen_flags: <defaults>
</compile_context>

<pallas_src>
import functools
import math

import jax
import jax.numpy as jnp
from jax.experimental import pallas as pl
from jax.experimental.pallas import tpu as pltpu

_EPS = 1e-5            # nn.LayerNorm default eps
_NEG_INF = -1e30       # stands in for masked_fill(mask, -inf)


def _layer_norm(x, g, b):
    mu = jnp.mean(x, axis=-1, keepdims=True)
    var = jnp.mean((x - mu) ** 2, axis=-1, keepdims=True)
    return (x - mu) * jax.lax.rsqrt(var + _EPS) * g + b


def _attention(q, k, v, mask_bias, wo_ref, bo_ref, g_ref, beta_ref, residual,
               attn_out_ref, *, n_head, d_k, d_v, cdt):
    """Head-batched scaled-dot-product attention + output proj + residual + LayerNorm.

    q: (Lq, H*d_k), k: (Lk, H*d_k), v: (Lk, H*d_v), mask_bias: (Lq, Lk) additive (0 / -inf)."""
    # Build head-major 3D operands once (H, L, d) instead of per-head matmul slicing.
    q3 = jnp.stack([q[:, h * d_k:(h + 1) * d_k] for h in range(n_head)], axis=0)
    k3 = jnp.stack([k[:, h * d_k:(h + 1) * d_k] for h in range(n_head)], axis=0)
    v3 = jnp.stack([v[:, h * d_v:(h + 1) * d_v] for h in range(n_head)], axis=0)

    scale = 1.0 / math.sqrt(d_k)
    # One batched MXU op over all heads; contraction on the last dims (no explicit .T).
    scores = jnp.einsum('hqd,hkd->hqk', q3.astype(cdt), k3.astype(cdt),
                        preferred_element_type=jnp.float32) * scale
    scores = scores + mask_bias[None, :, :]                 # hoisted mask, applied once
    scores = scores - jnp.max(scores, axis=-1, keepdims=True)
    e = jnp.exp(scores)
    denom = jnp.sum(e, axis=-1, keepdims=True)
    approx = cdt != jnp.float32                             # exact recip on the f32 check path
    attn = e * pl.reciprocal(denom, approx=approx)          # EUP reciprocal instead of a divide
    attn_out_ref[0] = attn                                  # one contiguous (H, Lq, Lk) slab

    ctx = jnp.einsum('hqk,hkd->hqd', attn.astype(cdt), v3.astype(cdt),
                     preferred_element_type=jnp.float32)    # (H, Lq, d_v)
    o = jnp.concatenate([ctx[h] for h in range(n_head)], axis=-1)   # (Lq, H*d_v), head-major
    o = jnp.dot(o.astype(cdt), wo_ref[...],
                preferred_element_type=jnp.float32) + bo_ref[...]
    return _layer_norm(o + residual, g_ref[...], beta_ref[...])


def _decoder_layer_kernel(dec_ref, enc_ref, npm_ref, slf_m_ref, de_m_ref,
                          s_wqkv, s_bqkv, s_wo, s_bo, s_g, s_b,
                          e_wq, e_bq, e_wkv, e_bkv, e_wo, e_bo, e_g, e_b,
                          f_w1, f_b1, f_w2, f_b2, f_g, f_b,
                          out_ref, slf_attn_ref, de_attn_ref,
                          *, n_head, d_k, d_v, compute_dtype):
    cdt = compute_dtype
    hk = n_head * d_k
    hv = n_head * d_v

    x = dec_ref[0]           # (Lq, D)
    enc = enc_ref[0]         # (Lk, D)
    npm = npm_ref[0]         # (Lq, 1)

    # ---- self attention (fused Q|K|V projection: one matmul) ----
    qkv = jnp.dot(x.astype(cdt), s_wqkv[...],
                  preferred_element_type=jnp.float32) + s_bqkv[...]
    q = qkv[:, :hk]
    k = qkv[:, hk:2 * hk]
    v = qkv[:, 2 * hk:2 * hk + hv]
    slf_bias = jnp.where(slf_m_ref[0] > 0.0, _NEG_INF, 0.0)
    d1 = _attention(q, k, v, slf_bias, s_wo, s_bo, s_g, s_b, x, slf_attn_ref,
                    n_head=n_head, d_k=d_k, d_v=d_v, cdt=cdt)
    d1 = d1 * npm

    # ---- encoder-decoder attention (fused K|V projection) ----
    q2 = jnp.dot(d1.astype(cdt), e_wq[...],
                 preferred_element_type=jnp.float32) + e_bq[...]
    kv = jnp.dot(enc.astype(cdt), e_wkv[...],
                 preferred_element_type=jnp.float32) + e_bkv[...]
    k2 = kv[:, :hk]
    v2 = kv[:, hk:hk + hv]
    de_bias = jnp.where(de_m_ref[0] > 0.0, _NEG_INF, 0.0)
    d2 = _attention(q2, k2, v2, de_bias, e_wo, e_bo, e_g, e_b, d1, de_attn_ref,
                    n_head=n_head, d_k=d_k, d_v=d_v, cdt=cdt)
    d2 = d2 * npm

    # ---- position-wise FFN (Conv1d kernel_size=1 == per-token matmul) ----
    h1 = jnp.maximum(
        jnp.dot(d2.astype(cdt), f_w1[...], preferred_element_type=jnp.float32) + f_b1[...], 0.0)
    h2 = jnp.dot(h1.astype(cdt), f_w2[...],
                 preferred_element_type=jnp.float32) + f_b2[...]
    d3 = _layer_norm(h2 + d2, f_g[...], f_b[...]) * npm

    out_ref[0] = d3


def decoder_layer(dec_input, enc_output, non_pad_mask, slf_attn_mask,
                  dec_enc_attn_mask, params, *, n_head, d_k, d_v,
                  compute_dtype=jnp.bfloat16):
    """compute_dtype: dtype used for MXU operands (accumulation is always f32)."""
    B, Lq, D = dec_input.shape
    Lk = enc_output.shape[1]

    (s_wq, s_bq, s_wk, s_bk, s_wv, s_bv, s_wo, s_bo, s_g, s_b,
     e_wq, e_bq, e_wk, e_bk, e_wv, e_bv, e_wo, e_bo, e_g, e_b,
     f_w1, f_b1, f_w2, f_b2, f_g, f_b) = params

    wdt = compute_dtype
    # Pack / cast weights once in the wrapper (fused QKV & KV; weights in compute dtype,
    # biases and LayerNorm params stay f32 since they are added post-accumulation).
    packed = [
        jnp.concatenate([s_wq, s_wk, s_wv], axis=1).astype(wdt),   # (D, 2*H*dk + H*dv)
        jnp.concatenate([s_bq, s_bk, s_bv], axis=1),
        s_wo.astype(wdt), s_bo, s_g, s_b,
        e_wq.astype(wdt), e_bq,
        jnp.concatenate([e_wk, e_wv], axis=1).astype(wdt),         # (D, H*dk + H*dv)
        jnp.concatenate([e_bk, e_bv], axis=1),
        e_wo.astype(wdt), e_bo, e_g, e_b,
        f_w1.astype(wdt), f_b1, f_w2.astype(wdt), f_b2, f_g, f_b,
    ]

    in_specs = [
        pl.BlockSpec((1, Lq, D), lambda b: (b, 0, 0)),
        pl.BlockSpec((1, Lk, D), lambda b: (b, 0, 0)),
        pl.BlockSpec((1, Lq, 1), lambda b: (b, 0, 0)),
        pl.BlockSpec((1, Lq, Lq), lambda b: (b, 0, 0)),
        pl.BlockSpec((1, Lq, Lk), lambda b: (b, 0, 0)),
    ] + [pl.BlockSpec(p.shape, lambda b: (0, 0)) for p in packed]   # all params are 2D

    out_shape = (
        jax.ShapeDtypeStruct((B, Lq, D), jnp.float32),
        jax.ShapeDtypeStruct((B, n_head, Lq, Lq), jnp.float32),
        jax.ShapeDtypeStruct((B, n_head, Lq, Lk), jnp.float32),
    )
    # Attention-prob outputs: one lane-dense contiguous slab per batch element (grid index
    # on the leading axis); layout fix-up to the PyTorch convention is done in the wrapper.
    out_specs = (
        pl.BlockSpec((1, Lq, D), lambda b: (b, 0, 0)),
        pl.BlockSpec((1, n_head, Lq, Lq), lambda b: (b, 0, 0, 0)),
        pl.BlockSpec((1, n_head, Lq, Lk), lambda b: (b, 0, 0, 0)),
    )

    kernel = functools.partial(_decoder_layer_kernel, n_head=n_head, d_k=d_k, d_v=d_v,
                               compute_dtype=compute_dtype)
    out, slf_attn, de_attn = pl.pallas_call(
        kernel,
        grid=(B,),
        in_specs=in_specs,
        out_specs=out_specs,
        out_shape=out_shape,
        compiler_params=pltpu.CompilerParams(
            dimension_semantics=("parallel",),          # megacore-shard the batch grid (v7x)
            vmem_limit_bytes=32 * 1024 * 1024),         # explicit scoped-VMEM budget
    )(dec_input, enc_output, non_pad_mask, slf_attn_mask, dec_enc_attn_mask, *packed)

    # PyTorch returns attn of shape (n_head * B, Lq, Lk) with head-major flattening.
    slf_attn = jnp.transpose(slf_attn, (1, 0, 2, 3)).reshape(n_head * B, Lq, Lq)
    de_attn = jnp.transpose(de_attn, (1, 0, 2, 3)).reshape(n_head * B, Lq, Lk)
    return out, slf_attn, de_attn


# ---------------------------------------------------------------------------
# deterministic parameter construction (shapes implied by the PyTorch __init__)
# ---------------------------------------------------------------------------
def make_params(key, d_model, d_inner, n_head, d_k, d_v):
    keys = jax.random.split(key, 20)
    it = iter(keys)

    def nrm(shape, fan_in):
        return jax.random.normal(next(it), shape, jnp.float32) / math.sqrt(fan_in)

    def attn_set():
        return [
            nrm((d_model, n_head * d_k), d_model),       # w_qs (stored as (in, out))
            nrm((1, n_head * d_k), d_model),             # b_qs
            nrm((d_model, n_head * d_k), d_model),       # w_ks
            nrm((1, n_head * d_k), d_model),             # b_ks
            nrm((d_model, n_head * d_v), d_model),       # w_vs
            nrm((1, n_head * d_v), d_model),             # b_vs
            nrm((n_head * d_v, d_model), n_head * d_v),  # fc.weight
            nrm((1, d_model), n_head * d_v),             # fc.bias
            jnp.ones((1, d_model), jnp.float32),         # LayerNorm gamma
            jnp.zeros((1, d_model), jnp.float32),        # LayerNorm beta
        ]

    params = attn_set() + attn_set() + [
        nrm((d_model, d_inner), d_model),                # w_1 (Conv1d k=1, as matmul)
        nrm((1, d_inner), d_model),                      # b_1
        nrm((d_inner, d_model), d_inner),                # w_2
        nrm((1, d_model), d_inner),                      # b_2
        jnp.ones((1, d_model), jnp.float32),             # LayerNorm gamma
        jnp.zeros((1, d_model), jnp.float32),            # LayerNorm beta
    ]
    return params


# ---------------------------------------------------------------------------
# pure-JAX reference (mirrors the PyTorch forward) for correctness checking
# ---------------------------------------------------------------------------
def _ref_mha(xq, xkv, mask, wq, bq, wk, bk, wv, bv, wo, bo, g, bln, n_head, d_k, d_v):
    B, Lq, _ = xq.shape
    Lk = xkv.shape[1]
    q = (xq @ wq + bq).reshape(B, Lq, n_head, d_k).transpose(2, 0, 1, 3)
    k = (xkv @ wk + bk).reshape(B, Lk, n_head, d_k).transpose(2, 0, 1, 3)
    v = (xkv @ wv + bv).reshape(B, Lk, n_head, d_v).transpose(2, 0, 1, 3)
    scores = jnp.einsum('hbqd,hbkd->hbqk', q, k) / math.sqrt(d_k)
    scores = jnp.where(mask[None] > 0.0, _NEG_INF, scores)
    attn = jax.nn.softmax(scores, axis=-1)
    o = jnp.einsum('hbqk,hbkd->bqhd', attn, v).reshape(B, Lq, n_head * d_v)
    o = o @ wo + bo
    out = _layer_norm(o + xq, g, bln)
    return out, attn.reshape(n_head * B, Lq, Lk)


def ref_decoder_layer(dec_input, enc_output, non_pad_mask, slf_attn_mask,
                      dec_enc_attn_mask, params, *, n_head, d_k, d_v):
    (s_wq, s_bq, s_wk, s_bk, s_wv, s_bv, s_wo, s_bo, s_g, s_b,
     e_wq, e_bq, e_wk, e_bk, e_wv, e_bv, e_wo, e_bo, e_g, e_b,
     f_w1, f_b1, f_w2, f_b2, f_g, f_b) = params
    d1, slf_attn = _ref_mha(dec_input, dec_input, slf_attn_mask,
                            s_wq, s_bq, s_wk, s_bk, s_wv, s_bv, s_wo, s_bo, s_g, s_b,
                            n_head, d_k, d_v)
    d1 = d1 * non_pad_mask
    d2, de_attn = _ref_mha(d1, enc_output, dec_enc_attn_mask,
                           e_wq, e_bq, e_wk, e_bk, e_wv, e_bv, e_wo, e_bo, e_g, e_b,
                           n_head, d_k, d_v)
    d2 = d2 * non_pad_mask
    h1 = jnp.maximum(d2 @ f_w1 + f_b1, 0.0)
    h2 = h1 @ f_w2 + f_b2
    d3 = _layer_norm(h2 + d2, f_g, f_b)
    d3 = d3 * non_pad_mask
    return d3, slf_attn, de_attn


if __name__ == "__main__":
    B, Lq, Lk = 2, 8, 16
    d_model, d_inner, n_head, d_k, d_v = 32, 64, 4, 8, 8

    root = jax.random.PRNGKey(0)
    k_in, k_par = jax.random.split(root)
    k_dec, k_enc = jax.random.split(k_in)
    dec_input = jax.random.normal(k_dec, (B, Lq, d_model), jnp.float32)
    enc_output = jax.random.normal(k_enc, (B, Lk, d_model), jnp.float32)

    # non_pad_mask: 1.0 = real token, 0.0 = padding (last 2 positions of batch 1 padded)
    non_pad_mask = jnp.ones((B, Lq, 1), jnp.float32).at[1, 6:, 0].set(0.0)
    # slf_attn_mask: causal mask, 1.0 = masked
    slf_attn_mask = jnp.broadcast_to(
        jnp.triu(jnp.ones((Lq, Lq), jnp.float32), k=1), (B, Lq, Lq))
    # dec_enc_attn_mask: mask last 2 encoder positions of batch 0
    dec_enc_attn_mask = jnp.zeros((B, Lq, Lk), jnp.float32).at[0, :, 14:].set(1.0)

    params = make_params(k_par, d_model, d_inner, n_head, d_k, d_v)

    ref_out, ref_slf, ref_de = ref_decoder_layer(
        dec_input, enc_output, non_pad_mask, slf_attn_mask, dec_enc_attn_mask,
        params, n_head=n_head, d_k=d_k, d_v=d_v)

    # ---- precise path (f32 matmuls): tight correctness check against the reference ----
    out, slf_attn, de_attn = decoder_layer(
        dec_input, enc_output, non_pad_mask, slf_attn_mask, dec_enc_attn_mask,
        params, n_head=n_head, d_k=d_k, d_v=d_v, compute_dtype=jnp.float32)
    jax.block_until_ready((out, slf_attn, de_attn))

    assert out.shape == (B, Lq, d_model)
    assert slf_attn.shape == (n_head * B, Lq, Lq)
    assert de_attn.shape == (n_head * B, Lq, Lk)
    assert jnp.allclose(out, ref_out, atol=1e-4, rtol=1e-4), "dec_output mismatch (f32)"
    assert jnp.allclose(slf_attn, ref_slf, atol=1e-4, rtol=1e-4), "slf_attn mismatch (f32)"
    assert jnp.allclose(de_attn, ref_de, atol=1e-4, rtol=1e-4), "enc_attn mismatch (f32)"

    # ---- fast path (bf16 MXU operands, f32 accumulation): loose numerical check ----
    out_b, slf_b, de_b = decoder_layer(
        dec_input, enc_output, non_pad_mask, slf_attn_mask, dec_enc_attn_mask,
        params, n_head=n_head, d_k=d_k, d_v=d_v, compute_dtype=jnp.bfloat16)
    jax.block_until_ready((out_b, slf_b, de_b))

    assert jnp.allclose(out_b, ref_out, atol=1e-1, rtol=1e-1), "dec_output mismatch (bf16)"
    assert jnp.allclose(slf_b, ref_slf, atol=5e-2, rtol=5e-2), "slf_attn mismatch (bf16)"
    assert jnp.allclose(de_b, ref_de, atol=5e-2, rtol=5e-2), "enc_attn mismatch (bf16)"

    print("KERNEL_OK")
</pallas_src>

<mosaic_0001>
module attributes {stable_mosaic.version = 11 : i64} {
  func.func @_decoder_layer_kernel(%arg0: i32, %arg1: memref<1x8x32xf32, #tpu.memory_space<vmem>>, %arg2: memref<1x16x32xf32, #tpu.memory_space<vmem>>, %arg3: memref<1x8x1xf32, #tpu.memory_space<vmem>>, %arg4: memref<1x8x8xf32, #tpu.memory_space<vmem>>, %arg5: memref<1x8x16xf32, #tpu.memory_space<vmem>>, %arg6: memref<32x96xf32, #tpu.memory_space<vmem>>, %arg7: memref<1x96xf32, #tpu.memory_space<vmem>>, %arg8: memref<32x32xf32, #tpu.memory_space<vmem>>, %arg9: memref<1x32xf32, #tpu.memory_space<vmem>>, %arg10: memref<1x32xf32, #tpu.memory_space<vmem>>, %arg11: memref<1x32xf32, #tpu.memory_space<vmem>>, %arg12: memref<32x32xf32, #tpu.memory_space<vmem>>, %arg13: memref<1x32xf32, #tpu.memory_space<vmem>>, %arg14: memref<32x64xf32, #tpu.memory_space<vmem>>, %arg15: memref<1x64xf32, #tpu.memory_space<vmem>>, %arg16: memref<32x32xf32, #tpu.memory_space<vmem>>, %arg17: memref<1x32xf32, #tpu.memory_space<vmem>>, %arg18: memref<1x32xf32, #tpu.memory_space<vmem>>, %arg19: memref<1x32xf32, #tpu.memory_space<vmem>>, %arg20: memref<32x64xf32, #tpu.memory_space<vmem>>, %arg21: memref<1x64xf32, #tpu.memory_space<vmem>>, %arg22: memref<64x32xf32, #tpu.memory_space<vmem>>, %arg23: memref<1x32xf32, #tpu.memory_space<vmem>>, %arg24: memref<1x32xf32, #tpu.memory_space<vmem>>, %arg25: memref<1x32xf32, #tpu.memory_space<vmem>>, %arg26: memref<1x8x32xf32, #tpu.memory_space<vmem>>, %arg27: memref<1x4x8x8xf32, #tpu.memory_space<vmem>>, %arg28: memref<1x4x8x16xf32, #tpu.memory_space<vmem>>) attributes {dimension_semantics = [#tpu.dimension_semantics<parallel>], iteration_bounds = array<i64: 2>, scalar_prefetch = 0 : i64, scratch_operands = 0 : i64, tpu.core_type = #tpu.core_type<tc>, window_params = [{transform_indices = @transform_0, window_bounds = array<i64: 1, 8, 32>}, {transform_indices = @transform_1, window_bounds = array<i64: 1, 16, 32>}, {transform_indices = @transform_2, window_bounds = array<i64: 1, 8, 1>}, {transform_indices = @transform_3, window_bounds = array<i64: 1, 8, 8>}, {transform_indices = @transform_4, window_bounds = array<i64: 1, 8, 16>}, {pipeline_mode = #tpu.pipeline_mode<synchronous>, transform_indices = @transform_5, window_bounds = array<i64: 32, 96>}, {pipeline_mode = #tpu.pipeline_mode<synchronous>, transform_indices = @transform_6, window_bounds = array<i64: 1, 96>}, {pipeline_mode = #tpu.pipeline_mode<synchronous>, transform_indices = @transform_7, window_bounds = array<i64: 32, 32>}, {pipeline_mode = #tpu.pipeline_mode<synchronous>, transform_indices = @transform_8, window_bounds = array<i64: 1, 32>}, {pipeline_mode = #tpu.pipeline_mode<synchronous>, transform_indices = @transform_9, window_bounds = array<i64: 1, 32>}, {pipeline_mode = #tpu.pipeline_mode<synchronous>, transform_indices = @transform_10, window_bounds = array<i64: 1, 32>}, {pipeline_mode = #tpu.pipeline_mode<synchronous>, transform_indices = @transform_11, window_bounds = array<i64: 32, 32>}, {pipeline_mode = #tpu.pipeline_mode<synchronous>, transform_indices = @transform_12, window_bounds = array<i64: 1, 32>}, {pipeline_mode = #tpu.pipeline_mode<synchronous>, transform_indices = @transform_13, window_bounds = array<i64: 32, 64>}, {pipeline_mode = #tpu.pipeline_mode<synchronous>, transform_indices = @transform_14, window_bounds = array<i64: 1, 64>}, {pipeline_mode = #tpu.pipeline_mode<synchronous>, transform_indices = @transform_15, window_bounds = array<i64: 32, 32>}, {pipeline_mode = #tpu.pipeline_mode<synchronous>, transform_indices = @transform_16, window_bounds = array<i64: 1, 32>}, {pipeline_mode = #tpu.pipeline_mode<synchronous>, transform_indices = @transform_17, window_bounds = array<i64: 1, 32>}, {pipeline_mode = #tpu.pipeline_mode<synchronous>, transform_indices = @transform_18, window_bounds = array<i64: 1, 32>}, {pipeline_mode = #tpu.pipeline_mode<synchronous>, transform_indices = @transform_19, window_bounds = array<i64: 32, 64>}, {pipeline_mode = #tpu.pipeline_mode<synchronous>, transform_indices = @transform_20, window_bounds = array<i64: 1, 64>}, {pipeline_mode = #tpu.pipeline_mode<synchronous>, transform_indices = @transform_21, window_bounds = array<i64: 64, 32>}, {pipeline_mode = #tpu.pipeline_mode<synchronous>, transform_indices = @transform_22, window_bounds = array<i64: 1, 32>}, {pipeline_mode = #tpu.pipeline_mode<synchronous>, transform_indices = @transform_23, window_bounds = array<i64: 1, 32>}, {pipeline_mode = #tpu.pipeline_mode<synchronous>, transform_indices = @transform_24, window_bounds = array<i64: 1, 32>}, {transform_indices = @transform_25, window_bounds = array<i64: 1, 8, 32>}, {transform_indices = @transform_26, window_bounds = array<i64: 1, 4, 8, 8>}, {transform_indices = @transform_27, window_bounds = array<i64: 1, 4, 8, 16>}]} {
    %c0 = arith.constant 0 : index
    %c0_0 = arith.constant 0 : index
    %c0_1 = arith.constant 0 : index
    %0 = vector.load %arg1[%c0, %c0_0, %c0_1] : memref<1x8x32xf32, #tpu.memory_space<vmem>>, vector<1x8x32xf32>
    %1 = vector.shape_cast %0 : vector<1x8x32xf32> to vector<8x32xf32>
    %c0_2 = arith.constant 0 : index
    %c0_3 = arith.constant 0 : index
    %c0_4 = arith.constant 0 : index
    %2 = vector.load %arg2[%c0_2, %c0_3, %c0_4] : memref<1x16x32xf32, #tpu.memory_space<vmem>>, vector<1x16x32xf32>
    %3 = vector.shape_cast %2 : vector<1x16x32xf32> to vector<16x32xf32>
    %c0_5 = arith.constant 0 : index
    %c0_6 = arith.constant 0 : index
    %c0_7 = arith.constant 0 : index
    %4 = vector.load %arg3[%c0_5, %c0_6, %c0_7] : memref<1x8x1xf32, #tpu.memory_space<vmem>>, vector<1x8x1xf32>
    %5 = vector.shape_cast %4 : vector<1x8x1xf32> to vector<8x1xf32>
    %c0_8 = arith.constant 0 : index
    %c0_9 = arith.constant 0 : index
    %6 = vector.load %arg6[%c0_8, %c0_9] : memref<32x96xf32, #tpu.memory_space<vmem>>, vector<32x96xf32>
    %cst = arith.constant dense<0.000000e+00> : vector<8x96xf32>
    %7 = tpu.matmul %1, %6, %cst {dimension_numbers = #tpu.dot_dimension_numbers<[1], [0], [0], [1], [0, 0, 1, 1], [], []>} : vector<8x32xf32>, vector<32x96xf32>, vector<8x96xf32> -> vector<8x96xf32>
    %c0_10 = arith.constant 0 : index
    %c0_11 = arith.constant 0 : index
    %8 = vector.load %arg7[%c0_10, %c0_11] : memref<1x96xf32, #tpu.memory_space<vmem>>, vector<1x96xf32>
    %9 = vector.broadcast %8 : vector<1x96xf32> to vector<8x96xf32>
    %10 = arith.addf %7, %9 : vector<8x96xf32>
    %11 = vector.extract_strided_slice %10 {offsets = [0, 0], sizes = [8, 32], strides = [1, 1]} : vector<8x96xf32> to vector<8x32xf32>
    %12 = vector.extract_strided_slice %10 {offsets = [0, 32], sizes = [8, 32], strides = [1, 1]} : vector<8x96xf32> to vector<8x32xf32>
    %13 = vector.extract_strided_slice %10 {offsets = [0, 64], sizes = [8, 32], strides = [1, 1]} : vector<8x96xf32> to vector<8x32xf32>
    %c0_12 = arith.constant 0 : index
    %c0_13 = arith.constant 0 : index
    %c0_14 = arith.constant 0 : index
    %14 = vector.load %arg4[%c0_12, %c0_13, %c0_14] : memref<1x8x8xf32, #tpu.memory_space<vmem>>, vector<1x8x8xf32>
    %15 = vector.shape_cast %14 : vector<1x8x8xf32> to vector<8x8xf32>
    %cst_15 = arith.constant 0.000000e+00 : f32
    %16 = vector.broadcast %cst_15 : f32 to vector<8x8xf32>
    %17 = arith.cmpf ogt, %15, %16 : vector<8x8xf32>
    %cst_16 = arith.constant -1.000000e+30 : f32
    %cst_17 = arith.constant 0.000000e+00 : f32
    %18 = vector.broadcast %cst_16 : f32 to vector<8x8xf32>
    %19 = vector.broadcast %cst_17 : f32 to vector<8x8xf32>
    %20 = arith.select %17, %18, %19 : vector<8x8xi1>, vector<8x8xf32>
    %21 = vector.extract_strided_slice %11 {offsets = [0, 0], sizes = [8, 8], strides = [1, 1]} : vector<8x32xf32> to vector<8x8xf32>
    %22 = vector.extract_strided_slice %11 {offsets = [0, 8], sizes = [8, 8], strides = [1, 1]} : vector<8x32xf32> to vector<8x8xf32>
    %23 = vector.extract_strided_slice %11 {offsets = [0, 16], sizes = [8, 8], strides = [1, 1]} : vector<8x32xf32> to vector<8x8xf32>
    %24 = vector.extract_strided_slice %11 {offsets = [0, 24], sizes = [8, 8], strides = [1, 1]} : vector<8x32xf32> to vector<8x8xf32>
    %25 = vector.shape_cast %21 : vector<8x8xf32> to vector<1x8x8xf32>
    %26 = vector.shape_cast %22 : vector<8x8xf32> to vector<1x8x8xf32>
    %27 = vector.shape_cast %23 : vector<8x8xf32> to vector<1x8x8xf32>
    %28 = vector.shape_cast %24 : vector<8x8xf32> to vector<1x8x8xf32>
    %29 = tpu.concatenate %25, %26, %27, %28 in 0 : vector<1x8x8xf32>, vector<1x8x8xf32>, vector<1x8x8xf32>, vector<1x8x8xf32> -> vector<4x8x8xf32>
    %30 = vector.extract_strided_slice %12 {offsets = [0, 0], sizes = [8, 8], strides = [1, 1]} : vector<8x32xf32> to vector<8x8xf32>
    %31 = vector.extract_strided_slice %12 {offsets = [0, 8], sizes = [8, 8], strides = [1, 1]} : vector<8x32xf32> to vector<8x8xf32>
    %32 = vector.extract_strided_slice %12 {offsets = [0, 16], sizes = [8, 8], strides = [1, 1]} : vector<8x32xf32> to vector<8x8xf32>
    %33 = vector.extract_strided_slice %12 {offsets = [0, 24], sizes = [8, 8], strides = [1, 1]} : vector<8x32xf32> to vector<8x8xf32>
    %34 = vector.shape_cast %30 : vector<8x8xf32> to vector<1x8x8xf32>
    %35 = vector.shape_cast %31 : vector<8x8xf32> to vector<1x8x8xf32>
    %36 = vector.shape_cast %32 : vector<8x8xf32> to vector<1x8x8xf32>
    %37 = vector.shape_cast %33 : vector<8x8xf32> to vector<1x8x8xf32>
    %38 = tpu.concatenate %34, %35, %36, %37 in 0 : vector<1x8x8xf32>, vector<1x8x8xf32>, vector<1x8x8xf32>, vector<1x8x8xf32> -> vector<4x8x8xf32>
    %39 = vector.extract_strided_slice %13 {offsets = [0, 0], sizes = [8, 8], strides = [1, 1]} : vector<8x32xf32> to vector<8x8xf32>
    %40 = vector.extract_strided_slice %13 {offsets = [0, 8], sizes = [8, 8], strides = [1, 1]} : vector<8x32xf32> to vector<8x8xf32>
    %41 = vector.extract_strided_slice %13 {offsets = [0, 16], sizes = [8, 8], strides = [1, 1]} : vector<8x32xf32> to vector<8x8xf32>
    %42 = vector.extract_strided_slice %13 {offsets = [0, 24], sizes = [8, 8], strides = [1, 1]} : vector<8x32xf32> to vector<8x8xf32>
    %43 = vector.shape_cast %39 : vector<8x8xf32> to vector<1x8x8xf32>
    %44 = vector.shape_cast %40 : vector<8x8xf32> to vector<1x8x8xf32>
    %45 = vector.shape_cast %41 : vector<8x8xf32> to vector<1x8x8xf32>
    %46 = vector.shape_cast %42 : vector<8x8xf32> to vector<1x8x8xf32>
    %47 = tpu.concatenate %43, %44, %45, %46 in 0 : vector<1x8x8xf32>, vector<1x8x8xf32>, vector<1x8x8xf32>, vector<1x8x8xf32> -> vector<4x8x8xf32>
    "tpu.trace_start"() <{level = 10 : i32, message = "hqd,hkd->hqk"}> : () -> ()
    %cst_18 = arith.constant dense<0.000000e+00> : vector<4x8x8xf32>
    %48 = tpu.matmul %29, %38, %cst_18 {dimension_numbers = #tpu.dot_dimension_numbers<[2], [2], [1], [1], [0, 0, 0, 1, 1, 1], [0], [0]>} : vector<4x8x8xf32>, vector<4x8x8xf32>, vector<4x8x8xf32> -> vector<4x8x8xf32>
    "tpu.trace_stop"() : () -> ()
    %cst_19 = arith.constant 0.353553385 : f32
    %49 = vector.broadcast %cst_19 : f32 to vector<4x8x8xf32>
    %50 = arith.mulf %48, %49 : vector<4x8x8xf32>
    %51 = vector.shape_cast %20 : vector<8x8xf32> to vector<1x8x8xf32>
    %52 = vector.broadcast %51 : vector<1x8x8xf32> to vector<4x8x8xf32>
    %53 = arith.addf %50, %52 : vector<4x8x8xf32>
    %cst_20 = arith.constant dense<0xFF800000> : vector<4x8xf32>
    %54 = vector.multi_reduction <maximumf>, %53, %cst_20 [2] : vector<4x8x8xf32> to vector<4x8xf32>
    %55 = vector.shape_cast %54 : vector<4x8xf32> to vector<4x8x1xf32>
    %56 = vector.broadcast %55 : vector<4x8x1xf32> to vector<4x8x8xf32>
    %57 = arith.subf %53, %56 : vector<4x8x8xf32>
    %58 = math.exp %57 : vector<4x8x8xf32>
    %cst_21 = arith.constant dense<0.000000e+00> : vector<4x8xf32>
    %59 = vector.multi_reduction <add>, %58, %cst_21 [2] : vector<4x8x8xf32> to vector<4x8xf32>
    %60 = vector.shape_cast %59 : vector<4x8xf32> to vector<4x8x1xf32>
    %61 = tpu.reciprocal %60 : vector<4x8x1xf32> -> vector<4x8x1xf32>
    %62 = vector.broadcast %61 : vector<4x8x1xf32> to vector<4x8x8xf32>
    %63 = arith.mulf %58, %62 : vector<4x8x8xf32>
    %c0_22 = arith.constant 0 : index
    %c0_23 = arith.constant 0 : index
    %c0_24 = arith.constant 0 : index
    %c0_25 = arith.constant 0 : index
    %64 = vector.load %arg27[%c0_22, %c0_23, %c0_24, %c0_25] : memref<1x4x8x8xf32, #tpu.memory_space<vmem>>, vector<1x4x8x8xf32>
    %65 = vector.shape_cast %64 : vector<1x4x8x8xf32> to vector<4x8x8xf32>
    %66 = vector.shape_cast %63 : vector<4x8x8xf32> to vector<1x4x8x8xf32>
    tpu.vector_store %arg27[%c0_22, %c0_23, %c0_24, %c0_25], %66 {strides = array<i32>} : memref<1x4x8x8xf32, #tpu.memory_space<vmem>>, vector<1x4x8x8xf32>,
    "tpu.trace_start"() <{level = 10 : i32, message = "hqk,hkd->hqd"}> : () -> ()
    %cst_26 = arith.constant dense<0.000000e+00> : vector<4x8x8xf32>
    %67 = tpu.matmul %63, %47, %cst_26 {dimension_numbers = #tpu.dot_dimension_numbers<[2], [1], [1], [2], [0, 0, 0, 1, 1, 2], [0], [0]>} : vector<4x8x8xf32>, vector<4x8x8xf32>, vector<4x8x8xf32> -> vector<4x8x8xf32>
    "tpu.trace_stop"() : () -> ()
    %68 = vector.extract_strided_slice %67 {offsets = [0, 0, 0], sizes = [1, 8, 8], strides = [1, 1, 1]} : vector<4x8x8xf32> to vector<1x8x8xf32>
    %69 = vector.shape_cast %68 : vector<1x8x8xf32> to vector<8x8xf32>
    %70 = vector.extract_strided_slice %67 {offsets = [1, 0, 0], sizes = [1, 8, 8], strides = [1, 1, 1]} : vector<4x8x8xf32> to vector<1x8x8xf32>
    %71 = vector.shape_cast %70 : vector<1x8x8xf32> to vector<8x8xf32>
    %72 = vector.extract_strided_slice %67 {offsets = [2, 0, 0], sizes = [1, 8, 8], strides = [1, 1, 1]} : vector<4x8x8xf32> to vector<1x8x8xf32>
    %73 = vector.shape_cast %72 : vector<1x8x8xf32> to vector<8x8xf32>
    %74 = vector.extract_strided_slice %67 {offsets = [3, 0, 0], sizes = [1, 8, 8], strides = [1, 1, 1]} : vector<4x8x8xf32> to vector<1x8x8xf32>
    %75 = vector.shape_cast %74 : vector<1x8x8xf32> to vector<8x8xf32>
    %76 = tpu.concatenate %69, %71, %73, %75 in 1 : vector<8x8xf32>, vector<8x8xf32>, vector<8x8xf32>, vector<8x8xf32> -> vector<8x32xf32>
    %c0_27 = arith.constant 0 : index
    %c0_28 = arith.constant 0 : index
    %77 = vector.load %arg8[%c0_27, %c0_28] : memref<32x32xf32, #tpu.memory_space<vmem>>, vector<32x32xf32>
    %cst_29 = arith.constant dense<0.000000e+00> : vector<8x32xf32>
    %78 = tpu.matmul %76, %77, %cst_29 {dimension_numbers = #tpu.dot_dimension_numbers<[1], [0], [0], [1], [0, 0, 1, 1], [], []>} : vector<8x32xf32>, vector<32x32xf32>, vector<8x32xf32> -> vector<8x32xf32>
    %c0_30 = arith.constant 0 : index
    %c0_31 = arith.constant 0 : index
    %79 = vector.load %arg9[%c0_30, %c0_31] : memref<1x32xf32, #tpu.memory_space<vmem>>, vector<1x32xf32>
    %80 = vector.broadcast %79 : vector<1x32xf32> to vector<8x32xf32>
    %81 = arith.addf %78, %80 : vector<8x32xf32>
    %82 = arith.addf %81, %1 : vector<8x32xf32>
    %c0_32 = arith.constant 0 : index
    %c0_33 = arith.constant 0 : index
    %83 = vector.load %arg10[%c0_32, %c0_33] : memref<1x32xf32, #tpu.memory_space<vmem>>, vector<1x32xf32>
    %c0_34 = arith.constant 0 : index
    %c0_35 = arith.constant 0 : index
    %84 = vector.load %arg11[%c0_34, %c0_35] : memref<1x32xf32, #tpu.memory_space<vmem>>, vector<1x32xf32>
    %cst_36 = arith.constant dense<0.000000e+00> : vector<8xf32>
    %85 = vector.multi_reduction <add>, %82, %cst_36 [1] : vector<8x32xf32> to vector<8xf32>
    %86 = vector.shape_cast %85 : vector<8xf32> to vector<8x1xf32>
    %cst_37 = arith.constant 3.200000e+01 : f32
    %87 = vector.broadcast %cst_37 : f32 to vector<8x1xf32>
    %88 = arith.divf %86, %87 : vector<8x1xf32>
    %89 = vector.broadcast %88 : vector<8x1xf32> to vector<8x32xf32>
    %90 = arith.subf %82, %89 : vector<8x32xf32>
    %91 = arith.mulf %90, %90 : vector<8x32xf32>
    %cst_38 = arith.constant dense<0.000000e+00> : vector<8xf32>
    %92 = vector.multi_reduction <add>, %91, %cst_38 [1] : vector<8x32xf32> to vector<8xf32>
    %93 = vector.shape_cast %92 : vector<8xf32> to vector<8x1xf32>
    %cst_39 = arith.constant 3.200000e+01 : f32
    %94 = vector.broadcast %cst_39 : f32 to vector<8x1xf32>
    %95 = arith.divf %93, %94 : vector<8x1xf32>
    %96 = vector.broadcast %88 : vector<8x1xf32> to vector<8x32xf32>
    %97 = arith.subf %82, %96 : vector<8x32xf32>
    %cst_40 = arith.constant 9.99999974E-6 : f32
    %98 = vector.broadcast %cst_40 : f32 to vector<8x1xf32>
    %99 = arith.addf %95, %98 : vector<8x1xf32>
    %100 = math.rsqrt %99 : vector<8x1xf32>
    %101 = vector.broadcast %100 : vector<8x1xf32> to vector<8x32xf32>
    %102 = arith.mulf %97, %101 : vector<8x32xf32>
    %103 = vector.broadcast %83 : vector<1x32xf32> to vector<8x32xf32>
    %104 = arith.mulf %102, %103 : vector<8x32xf32>
    %105 = vector.broadcast %84 : vector<1x32xf32> to vector<8x32xf32>
    %106 = arith.addf %104, %105 : vector<8x32xf32>
    %107 = vector.broadcast %5 : vector<8x1xf32> to vector<8x32xf32>
    %108 = arith.mulf %106, %107 : vector<8x32xf32>
    %c0_41 = arith.constant 0 : index
    %c0_42 = arith.constant 0 : index
    %109 = vector.load %arg12[%c0_41, %c0_42] : memref<32x32xf32, #tpu.memory_space<vmem>>, vector<32x32xf32>
    %cst_43 = arith.constant dense<0.000000e+00> : vector<8x32xf32>
    %110 = tpu.matmul %108, %109, %cst_43 {dimension_numbers = #tpu.dot_dimension_numbers<[1], [0], [0], [1], [0, 0, 1, 1], [], []>} : vector<8x32xf32>, vector<32x32xf32>, vector<8x32xf32> -> vector<8x32xf32>
    %c0_44 = arith.constant 0 : index
    %c0_45 = arith.constant 0 : index
    %111 = vector.load %arg13[%c0_44, %c0_45] : memref<1x32xf32, #tpu.memory_space<vmem>>, vector<1x32xf32>
    %112 = vector.broadcast %111 : vector<1x32xf32> to vector<8x32xf32>
    %113 = arith.addf %110, %112 : vector<8x32xf32>
    %c0_46 = arith.constant 0 : index
    %c0_47 = arith.constant 0 : index
    %114 = vector.load %arg14[%c0_46, %c0_47] : memref<32x64xf32, #tpu.memory_space<vmem>>, vector<32x64xf32>
    %cst_48 = arith.constant dense<0.000000e+00> : vector<16x64xf32>
    %115 = tpu.matmul %3, %114, %cst_48 {dimension_numbers = #tpu.dot_dimension_numbers<[1], [0], [0], [1], [0, 0, 1, 1], [], []>} : vector<16x32xf32>, vector<32x64xf32>, vector<16x64xf32> -> vector<16x64xf32>
    %c0_49 = arith.constant 0 : index
    %c0_50 = arith.constant 0 : index
    %116 = vector.load %arg15[%c0_49, %c0_50] : memref<1x64xf32, #tpu.memory_space<vmem>>, vector<1x64xf32>
    %117 = vector.broadcast %116 : vector<1x64xf32> to vector<16x64xf32>
    %118 = arith.addf %115, %117 : vector<16x64xf32>
    %119 = vector.extract_strided_slice %118 {offsets = [0, 0], sizes = [16, 32], strides = [1, 1]} : vector<16x64xf32> to vector<16x32xf32>
    %120 = vector.extract_strided_slice %118 {offsets = [0, 32], sizes = [16, 32], strides = [1, 1]} : vector<16x64xf32> to vector<16x32xf32>
    %c0_51 = arith.constant 0 : index
    %c0_52 = arith.constant 0 : index
    %c0_53 = arith.constant 0 : index
    %121 = vector.load %arg5[%c0_51, %c0_52, %c0_53] : memref<1x8x16xf32, #tpu.memory_space<vmem>>, vector<1x8x16xf32>
    %122 = vector.shape_cast %121 : vector<1x8x16xf32> to vector<8x16xf32>
    %cst_54 = arith.constant 0.000000e+00 : f32
    %123 = vector.broadcast %cst_54 : f32 to vector<8x16xf32>
    %124 = arith.cmpf ogt, %122, %123 : vector<8x16xf32>
    %cst_55 = arith.constant -1.000000e+30 : f32
    %cst_56 = arith.constant 0.000000e+00 : f32
    %125 = vector.broadcast %cst_55 : f32 to vector<8x16xf32>
    %126 = vector.broadcast %cst_56 : f32 to vector<8x16xf32>
    %127 = arith.select %124, %125, %126 : vector<8x16xi1>, vector<8x16xf32>
    %128 = vector.extract_strided_slice %113 {offsets = [0, 0], sizes = [8, 8], strides = [1, 1]} : vector<8x32xf32> to vector<8x8xf32>
    %129 = vector.extract_strided_slice %113 {offsets = [0, 8], sizes = [8, 8], strides = [1, 1]} : vector<8x32xf32> to vector<8x8xf32>
    %130 = vector.extract_strided_slice %113 {offsets = [0, 16], sizes = [8, 8], strides = [1, 1]} : vector<8x32xf32> to vector<8x8xf32>
    %131 = vector.extract_strided_slice %113 {offsets = [0, 24], sizes = [8, 8], strides = [1, 1]} : vector<8x32xf32> to vector<8x8xf32>
    %132 = vector.shape_cast %128 : vector<8x8xf32> to vector<1x8x8xf32>
    %133 = vector.shape_cast %129 : vector<8x8xf32> to vector<1x8x8xf32>
    %134 = vector.shape_cast %130 : vector<8x8xf32> to vector<1x8x8xf32>
    %135 = vector.shape_cast %131 : vector<8x8xf32> to vector<1x8x8xf32>
    %136 = tpu.concatenate %132, %133, %134, %135 in 0 : vector<1x8x8xf32>, vector<1x8x8xf32>, vector<1x8x8xf32>, vector<1x8x8xf32> -> vector<4x8x8xf32>
    %137 = vector.extract_strided_slice %119 {offsets = [0, 0], sizes = [16, 8], strides = [1, 1]} : vector<16x32xf32> to vector<16x8xf32>
    %138 = vector.extract_strided_slice %119 {offsets = [0, 8], sizes = [16, 8], strides = [1, 1]} : vector<16x32xf32> to vector<16x8xf32>
    %139 = vector.extract_strided_slice %119 {offsets = [0, 16], sizes = [16, 8], strides = [1, 1]} : vector<16x32xf32> to vector<16x8xf32>
    %140 = vector.extract_strided_slice %119 {offsets = [0, 24], sizes = [16, 8], strides = [1, 1]} : vector<16x32xf32> to vector<16x8xf32>
    %141 = vector.shape_cast %137 : vector<16x8xf32> to vector<1x16x8xf32>
    %142 = vector.shape_cast %138 : vector<16x8xf32> to vector<1x16x8xf32>
    %143 = vector.shape_cast %139 : vector<16x8xf32> to vector<1x16x8xf32>
    %144 = vector.shape_cast %140 : vector<16x8xf32> to vector<1x16x8xf32>
    %145 = tpu.concatenate %141, %142, %143, %144 in 0 : vector<1x16x8xf32>, vector<1x16x8xf32>, vector<1x16x8xf32>, vector<1x16x8xf32> -> vector<4x16x8xf32>
    %146 = vector.extract_strided_slice %120 {offsets = [0, 0], sizes = [16, 8], strides = [1, 1]} : vector<16x32xf32> to vector<16x8xf32>
    %147 = vector.extract_strided_slice %120 {offsets = [0, 8], sizes = [16, 8], strides = [1, 1]} : vector<16x32xf32> to vector<16x8xf32>
    %148 = vector.extract_strided_slice %120 {offsets = [0, 16], sizes = [16, 8], strides = [1, 1]} : vector<16x32xf32> to vector<16x8xf32>
    %149 = vector.extract_strided_slice %120 {offsets = [0, 24], sizes = [16, 8], strides = [1, 1]} : vector<16x32xf32> to vector<16x8xf32>
    %150 = vector.shape_cast %146 : vector<16x8xf32> to vector<1x16x8xf32>
    %151 = vector.shape_cast %147 : vector<16x8xf32> to vector<1x16x8xf32>
    %152 = vector.shape_cast %148 : vector<16x8xf32> to vector<1x16x8xf32>
    %153 = vector.shape_cast %149 : vector<16x8xf32> to vector<1x16x8xf32>
    %154 = tpu.concatenate %150, %151, %152, %153 in 0 : vector<1x16x8xf32>, vector<1x16x8xf32>, vector<1x16x8xf32>, vector<1x16x8xf32> -> vector<4x16x8xf32>
    "tpu.trace_start"() <{level = 10 : i32, message = "hqd,hkd->hqk"}> : () -> ()
    %cst_57 = arith.constant dense<0.000000e+00> : vector<4x8x16xf32>
    %155 = tpu.matmul %136, %145, %cst_57 {dimension_numbers = #tpu.dot_dimension_numbers<[2], [2], [1], [1], [0, 0, 0, 1, 1, 1], [0], [0]>} : vector<4x8x8xf32>, vector<4x16x8xf32>, vector<4x8x16xf32> -> vector<4x8x16xf32>
    "tpu.trace_stop"() : () -> ()
    %cst_58 = arith.constant 0.353553385 : f32
    %156 = vector.broadcast %cst_58 : f32 to vector<4x8x16xf32>
    %157 = arith.mulf %155, %156 : vector<4x8x16xf32>
    %158 = vector.shape_cast %127 : vector<8x16xf32> to vector<1x8x16xf32>
    %159 = vector.broadcast %158 : vector<1x8x16xf32> to vector<4x8x16xf32>
    %160 = arith.addf %157, %159 : vector<4x8x16xf32>
    %cst_59 = arith.constant dense<0xFF800000> : vector<4x8xf32>
    %161 = vector.multi_reduction <maximumf>, %160, %cst_59 [2] : vector<4x8x16xf32> to vector<4x8xf32>
    %162 = vector.shape_cast %161 : vector<4x8xf32> to vector<4x8x1xf32>
    %163 = vector.broadcast %162 : vector<4x8x1xf32> to vector<4x8x16xf32>
    %164 = arith.subf %160, %163 : vector<4x8x16xf32>
    %165 = math.exp %164 : vector<4x8x16xf32>
    %cst_60 = arith.constant dense<0.000000e+00> : vector<4x8xf32>
    %166 = vector.multi_reduction <add>, %165, %cst_60 [2] : vector<4x8x16xf32> to vector<4x8xf32>
    %167 = vector.shape_cast %166 : vector<4x8xf32> to vector<4x8x1xf32>
    %168 = tpu.reciprocal %167 : vector<4x8x1xf32> -> vector<4x8x1xf32>
    %169 = vector.broadcast %168 : vector<4x8x1xf32> to vector<4x8x16xf32>
    %170 = arith.mulf %165, %169 : vector<4x8x16xf32>
    %c0_61 = arith.constant 0 : index
    %c0_62 = arith.constant 0 : index
    %c0_63 = arith.constant 0 : index
    %c0_64 = arith.constant 0 : index
    %171 = vector.load %arg28[%c0_61, %c0_62, %c0_63, %c0_64] : memref<1x4x8x16xf32, #tpu.memory_space<vmem>>, vector<1x4x8x16xf32>
    %172 = vector.shape_cast %171 : vector<1x4x8x16xf32> to vector<4x8x16xf32>
    %173 = vector.shape_cast %170 : vector<4x8x16xf32> to vector<1x4x8x16xf32>
    tpu.vector_store %arg28[%c0_61, %c0_62, %c0_63, %c0_64], %173 {strides = array<i32>} : memref<1x4x8x16xf32, #tpu.memory_space<vmem>>, vector<1x4x8x16xf32>,
    "tpu.trace_start"() <{level = 10 : i32, message = "hqk,hkd->hqd"}> : () -> ()
    %cst_65 = arith.constant dense<0.000000e+00> : vector<4x8x8xf32>
    %174 = tpu.matmul %170, %154, %cst_65 {dimension_numbers = #tpu.dot_dimension_numbers<[2], [1], [1], [2], [0, 0, 0, 1, 1, 2], [0], [0]>} : vector<4x8x16xf32>, vector<4x16x8xf32>, vector<4x8x8xf32> -> vector<4x8x8xf32>
    "tpu.trace_stop"() : () -> ()
    %175 = vector.extract_strided_slice %174 {offsets = [0, 0, 0], sizes = [1, 8, 8], strides = [1, 1, 1]} : vector<4x8x8xf32> to vector<1x8x8xf32>
    %176 = vector.shape_cast %175 : vector<1x8x8xf32> to vector<8x8xf32>
    %177 = vector.extract_strided_slice %174 {offsets = [1, 0, 0], sizes = [1, 8, 8], strides = [1, 1, 1]} : vector<4x8x8xf32> to vector<1x8x8xf32>
    %178 = vector.shape_cast %177 : vector<1x8x8xf32> to vector<8x8xf32>
    %179 = vector.extract_strided_slice %174 {offsets = [2, 0, 0], sizes = [1, 8, 8], strides = [1, 1, 1]} : vector<4x8x8xf32> to vector<1x8x8xf32>
    %180 = vector.shape_cast %179 : vector<1x8x8xf32> to vector<8x8xf32>
    %181 = vector.extract_strided_slice %174 {offsets = [3, 0, 0], sizes = [1, 8, 8], strides = [1, 1, 1]} : vector<4x8x8xf32> to vector<1x8x8xf32>
    %182 = vector.shape_cast %181 : vector<1x8x8xf32> to vector<8x8xf32>
    %183 = tpu.concatenate %176, %178, %180, %182 in 1 : vector<8x8xf32>, vector<8x8xf32>, vector<8x8xf32>, vector<8x8xf32> -> vector<8x32xf32>
    %c0_66 = arith.constant 0 : index
    %c0_67 = arith.constant 0 : index
    %184 = vector.load %arg16[%c0_66, %c0_67] : memref<32x32xf32, #tpu.memory_space<vmem>>, vector<32x32xf32>
    %cst_68 = arith.constant dense<0.000000e+00> : vector<8x32xf32>
    %185 = tpu.matmul %183, %184, %cst_68 {dimension_numbers = #tpu.dot_dimension_numbers<[1], [0], [0], [1], [0, 0, 1, 1], [], []>} : vector<8x32xf32>, vector<32x32xf32>, vector<8x32xf32> -> vector<8x32xf32>
    %c0_69 = arith.constant 0 : index
    %c0_70 = arith.constant 0 : index
    %186 = vector.load %arg17[%c0_69, %c0_70] : memref<1x32xf32, #tpu.memory_space<vmem>>, vector<1x32xf32>
    %187 = vector.broadcast %186 : vector<1x32xf32> to vector<8x32xf32>
    %188 = arith.addf %185, %187 : vector<8x32xf32>
    %189 = arith.addf %188, %108 : vector<8x32xf32>
    %c0_71 = arith.constant 0 : index
    %c0_72 = arith.constant 0 : index
    %190 = vector.load %arg18[%c0_71, %c0_72] : memref<1x32xf32, #tpu.memory_space<vmem>>, vector<1x32xf32>
    %c0_73 = arith.constant 0 : index
    %c0_74 = arith.constant 0 : index
    %191 = vector.load %arg19[%c0_73, %c0_74] : memref<1x32xf32, #tpu.memory_space<vmem>>, vector<1x32xf32>
    %cst_75 = arith.constant dense<0.000000e+00> : vector<8xf32>
    %192 = vector.multi_reduction <add>, %189, %cst_75 [1] : vector<8x32xf32> to vector<8xf32>
    %193 = vector.shape_cast %192 : vector<8xf32> to vector<8x1xf32>
    %cst_76 = arith.constant 3.200000e+01 : f32
    %194 = vector.broadcast %cst_76 : f32 to vector<8x1xf32>
    %195 = arith.divf %193, %194 : vector<8x1xf32>
    %196 = vector.broadcast %195 : vector<8x1xf32> to vector<8x32xf32>
    %197 = arith.subf %189, %196 : vector<8x32xf32>
    %198 = arith.mulf %197, %197 : vector<8x32xf32>
    %cst_77 = arith.constant dense<0.000000e+00> : vector<8xf32>
    %199 = vector.multi_reduction <add>, %198, %cst_77 [1] : vector<8x32xf32> to vector<8xf32>
    %200 = vector.shape_cast %199 : vector<8xf32> to vector<8x1xf32>
    %cst_78 = arith.constant 3.200000e+01 : f32
    %201 = vector.broadcast %cst_78 : f32 to vector<8x1xf32>
    %202 = arith.divf %200, %201 : vector<8x1xf32>
    %203 = vector.broadcast %195 : vector<8x1xf32> to vector<8x32xf32>
    %204 = arith.subf %189, %203 : vector<8x32xf32>
    %cst_79 = arith.constant 9.99999974E-6 : f32
    %205 = vector.broadcast %cst_79 : f32 to vector<8x1xf32>
    %206 = arith.addf %202, %205 : vector<8x1xf32>
    %207 = math.rsqrt %206 : vector<8x1xf32>
    %208 = vector.broadcast %207 : vector<8x1xf32> to vector<8x32xf32>
    %209 = arith.mulf %204, %208 : vector<8x32xf32>
    %210 = vector.broadcast %190 : vector<1x32xf32> to vector<8x32xf32>
    %211 = arith.mulf %209, %210 : vector<8x32xf32>
    %212 = vector.broadcast %191 : vector<1x32xf32> to vector<8x32xf32>
    %213 = arith.addf %211, %212 : vector<8x32xf32>
    %214 = vector.broadcast %5 : vector<8x1xf32> to vector<8x32xf32>
    %215 = arith.mulf %213, %214 : vector<8x32xf32>
    %c0_80 = arith.constant 0 : index
    %c0_81 = arith.constant 0 : index
    %216 = vector.load %arg20[%c0_80, %c0_81] : memref<32x64xf32, #tpu.memory_space<vmem>>, vector<32x64xf32>
    %cst_82 = arith.constant dense<0.000000e+00> : vector<8x64xf32>
    %217 = tpu.matmul %215, %216, %cst_82 {dimension_numbers = #tpu.dot_dimension_numbers<[1], [0], [0], [1], [0, 0, 1, 1], [], []>} : vector<8x32xf32>, vector<32x64xf32>, vector<8x64xf32> -> vector<8x64xf32>
    %c0_83 = arith.constant 0 : index
    %c0_84 = arith.constant 0 : index
    %218 = vector.load %arg21[%c0_83, %c0_84] : memref<1x64xf32, #tpu.memory_space<vmem>>, vector<1x64xf32>
    %219 = vector.broadcast %218 : vector<1x64xf32> to vector<8x64xf32>
    %220 = arith.addf %217, %219 : vector<8x64xf32>
    %cst_85 = arith.constant 0.000000e+00 : f32
    %221 = vector.broadcast %cst_85 : f32 to vector<8x64xf32>
    %222 = arith.maximumf %220, %221 : vector<8x64xf32>
    %c0_86 = arith.constant 0 : index
    %c0_87 = arith.constant 0 : index
    %223 = vector.load %arg22[%c0_86, %c0_87] : memref<64x32xf32, #tpu.memory_space<vmem>>, vector<64x32xf32>
    %cst_88 = arith.constant dense<0.000000e+00> : vector<8x32xf32>
    %224 = tpu.matmul %222, %223, %cst_88 {dimension_numbers = #tpu.dot_dimension_numbers<[1], [0], [0], [1], [0, 0, 1, 1], [], []>} : vector<8x64xf32>, vector<64x32xf32>, vector<8x32xf32> -> vector<8x32xf32>
    %c0_89 = arith.constant 0 : index
    %c0_90 = arith.constant 0 : index
    %225 = vector.load %arg23[%c0_89, %c0_90] : memref<1x32xf32, #tpu.memory_space<vmem>>, vector<1x32xf32>
    %226 = vector.broadcast %225 : vector<1x32xf32> to vector<8x32xf32>
    %227 = arith.addf %224, %226 : vector<8x32xf32>
    %228 = arith.addf %227, %215 : vector<8x32xf32>
    %c0_91 = arith.constant 0 : index
    %c0_92 = arith.constant 0 : index
    %229 = vector.load %arg24[%c0_91, %c0_92] : memref<1x32xf32, #tpu.memory_space<vmem>>, vector<1x32xf32>
    %c0_93 = arith.constant 0 : index
    %c0_94 = arith.constant 0 : index
    %230 = vector.load %arg25[%c0_93, %c0_94] : memref<1x32xf32, #tpu.memory_space<vmem>>, vector<1x32xf32>
    %cst_95 = arith.constant dense<0.000000e+00> : vector<8xf32>
    %231 = vector.multi_reduction <add>, %228, %cst_95 [1] : vector<8x32xf32> to vector<8xf32>
    %232 = vector.shape_cast %231 : vector<8xf32> to vector<8x1xf32>
    %cst_96 = arith.constant 3.200000e+01 : f32
    %233 = vector.broadcast %cst_96 : f32 to vector<8x1xf32>
    %234 = arith.divf %232, %233 : vector<8x1xf32>
    %235 = vector.broadcast %234 : vector<8x1xf32> to vector<8x32xf32>
    %236 = arith.subf %228, %235 : vector<8x32xf32>
    %237 = arith.mulf %236, %236 : vector<8x32xf32>
    %cst_97 = arith.constant dense<0.000000e+00> : vector<8xf32>
    %238 = vector.multi_reduction <add>, %237, %cst_97 [1] : vector<8x32xf32> to vector<8xf32>
    %239 = vector.shape_cast %238 : vector<8xf32> to vector<8x1xf32>
    %cst_98 = arith.constant 3.200000e+01 : f32
    %240 = vector.broadcast %cst_98 : f32 to vector<8x1xf32>
    %241 = arith.divf %239, %240 : vector<8x1xf32>
    %242 = vector.broadcast %234 : vector<8x1xf32> to vector<8x32xf32>
    %243 = arith.subf %228, %242 : vector<8x32xf32>
    %cst_99 = arith.constant 9.99999974E-6 : f32
    %244 = vector.broadcast %cst_99 : f32 to vector<8x1xf32>
    %245 = arith.addf %241, %244 : vector<8x1xf32>
    %246 = math.rsqrt %245 : vector<8x1xf32>
    %247 = vector.broadcast %246 : vector<8x1xf32> to vector<8x32xf32>
    %248 = arith.mulf %243, %247 : vector<8x32xf32>
    %249 = vector.broadcast %229 : vector<1x32xf32> to vector<8x32xf32>
    %250 = arith.mulf %248, %249 : vector<8x32xf32>
    %251 = vector.broadcast %230 : vector<1x32xf32> to vector<8x32xf32>
    %252 = arith.addf %250, %251 : vector<8x32xf32>
    %253 = vector.broadcast %5 : vector<8x1xf32> to vector<8x32xf32>
    %254 = arith.mulf %252, %253 : vector<8x32xf32>
    %c0_100 = arith.constant 0 : index
    %c0_101 = arith.constant 0 : index
    %c0_102 = arith.constant 0 : index
    %255 = vector.load %arg26[%c0_100, %c0_101, %c0_102] : memref<1x8x32xf32, #tpu.memory_space<vmem>>, vector<1x8x32xf32>
    %256 = vector.shape_cast %255 : vector<1x8x32xf32> to vector<8x32xf32>
    %257 = vector.shape_cast %254 : vector<8x32xf32> to vector<1x8x32xf32>
    tpu.vector_store %arg26[%c0_100, %c0_101, %c0_102], %257 {strides = array<i32>} : memref<1x8x32xf32, #tpu.memory_space<vmem>>, vector<1x8x32xf32>,
    return
  }
  func.func @transform_0(%arg0: i32) -> (i32, i32, i32) {
    %c0_i32 = arith.constant 0 : i32
    %c0_i32_0 = arith.constant 0 : i32
    %c0_i32_1 = arith.constant 0 : i32
    return %arg0, %c0_i32, %c0_i32_0 : i32, i32, i32
  }
  func.func @transform_1(%arg0: i32) -> (i32, i32, i32) {
    %c0_i32 = arith.constant 0 : i32
    %c0_i32_0 = arith.constant 0 : i32
    %c0_i32_1 = arith.constant 0 : i32
    return %arg0, %c0_i32, %c0_i32_0 : i32, i32, i32
  }
  func.func @transform_2(%arg0: i32) -> (i32, i32, i32) {
    %c0_i32 = arith.constant 0 : i32
    %c0_i32_0 = arith.constant 0 : i32
    %c0_i32_1 = arith.constant 0 : i32
    return %arg0, %c0_i32, %c0_i32_0 : i32, i32, i32
  }
  func.func @transform_3(%arg0: i32) -> (i32, i32, i32) {
    %c0_i32 = arith.constant 0 : i32
    %c0_i32_0 = arith.constant 0 : i32
    %c0_i32_1 = arith.constant 0 : i32
    return %arg0, %c0_i32, %c0_i32_0 : i32, i32, i32
  }
  func.func @transform_4(%arg0: i32) -> (i32, i32, i32) {
    %c0_i32 = arith.constant 0 : i32
    %c0_i32_0 = arith.constant 0 : i32
    %c0_i32_1 = arith.constant 0 : i32
    return %arg0, %c0_i32, %c0_i32_0 : i32, i32, i32
  }
  func.func @transform_5(%arg0: i32) -> (i32, i32) {
    %c0_i32 = arith.constant 0 : i32
    %c0_i32_0 = arith.constant 0 : i32
    %c0_i32_1 = arith.constant 0 : i32
    return %c0_i32, %c0_i32_0 : i32, i32
  }
  func.func @transform_6(%arg0: i32) -> (i32, i32) {
    %c0_i32 = arith.constant 0 : i32
    %c0_i32_0 = arith.constant 0 : i32
    %c0_i32_1 = arith.constant 0 : i32
    return %c0_i32, %c0_i32_0 : i32, i32
  }
  func.func @transform_7(%arg0: i32) -> (i32, i32) {
    %c0_i32 = arith.constant 0 : i32
    %c0_i32_0 = arith.constant 0 : i32
    %c0_i32_1 = arith.constant 0 : i32
    return %c0_i32, %c0_i32_0 : i32, i32
  }
  func.func @transform_8(%arg0: i32) -> (i32, i32) {
    %c0_i32 = arith.constant 0 : i32
    %c0_i32_0 = arith.constant 0 : i32
    %c0_i32_1 = arith.constant 0 : i32
    return %c0_i32, %c0_i32_0 : i32, i32
  }
  func.func @transform_9(%arg0: i32) -> (i32, i32) {
    %c0_i32 = arith.constant 0 : i32
    %c0_i32_0 = arith.constant 0 : i32
    %c0_i32_1 = arith.constant 0 : i32
    return %c0_i32, %c0_i32_0 : i32, i32
  }
  func.func @transform_10(%arg0: i32) -> (i32, i32) {
    %c0_i32 = arith.constant 0 : i32
    %c0_i32_0 = arith.constant 0 : i32
    %c0_i32_1 = arith.constant 0 : i32
    return %c0_i32, %c0_i32_0 : i32, i32
  }
  func.func @transform_11(%arg0: i32) -> (i32, i32) {
    %c0_i32 = arith.constant 0 : i32
    %c0_i32_0 = arith.constant 0 : i32
    %c0_i32_1 = arith.constant 0 : i32
    return %c0_i32, %c0_i32_0 : i32, i32
  }
  func.func @transform_12(%arg0: i32) -> (i32, i32) {
    %c0_i32 = arith.constant 0 : i32
    %c0_i32_0 = arith.constant 0 : i32
    %c0_i32_1 = arith.constant 0 : i32
    return %c0_i32, %c0_i32_0 : i32, i32
  }
  func.func @transform_13(%arg0: i32) -> (i32, i32) {
    %c0_i32 = arith.constant 0 : i32
    %c0_i32_0 = arith.constant 0 : i32
    %c0_i32_1 = arith.constant 0 : i32
    return %c0_i32, %c0_i32_0 : i32, i32
  }
  func.func @transform_14(%arg0: i32) -> (i32, i32) {
    %c0_i32 = arith.constant 0 : i32
    %c0_i32_0 = arith.constant 0 : i32
    %c0_i32_1 = arith.constant 0 : i32
    return %c0_i32, %c0_i32_0 : i32, i32
  }
  func.func @transform_15(%arg0: i32) -> (i32, i32) {
    %c0_i32 = arith.constant 0 : i32
    %c0_i32_0 = arith.constant 0 : i32
    %c0_i32_1 = arith.constant 0 : i32
    return %c0_i32, %c0_i32_0 : i32, i32
  }
  func.func @transform_16(%arg0: i32) -> (i32, i32) {
    %c0_i32 = arith.constant 0 : i32
    %c0_i32_0 = arith.constant 0 : i32
    %c0_i32_1 = arith.constant 0 : i32
    return %c0_i32, %c0_i32_0 : i32, i32
  }
  func.func @transform_17(%arg0: i32) -> (i32, i32) {
    %c0_i32 = arith.constant 0 : i32
    %c0_i32_0 = arith.constant 0 : i32
    %c0_i32_1 = arith.constant 0 : i32
    return %c0_i32, %c0_i32_0 : i32, i32
  }
  func.func @transform_18(%arg0: i32) -> (i32, i32) {
    %c0_i32 = arith.constant 0 : i32
    %c0_i32_0 = arith.constant 0 : i32
    %c0_i32_1 = arith.constant 0 : i32
    return %c0_i32, %c0_i32_0 : i32, i32
  }
  func.func @transform_19(%arg0: i32) -> (i32, i32) {
    %c0_i32 = arith.constant 0 : i32
    %c0_i32_0 = arith.constant 0 : i32
    %c0_i32_1 = arith.constant 0 : i32
    return %c0_i32, %c0_i32_0 : i32, i32
  }
  func.func @transform_20(%arg0: i32) -> (i32, i32) {
    %c0_i32 = arith.constant 0 : i32
    %c0_i32_0 = arith.constant 0 : i32
    %c0_i32_1 = arith.constant 0 : i32
    return %c0_i32, %c0_i32_0 : i32, i32
  }
  func.func @transform_21(%arg0: i32) -> (i32, i32) {
    %c0_i32 = arith.constant 0 : i32
    %c0_i32_0 = arith.constant 0 : i32
    %c0_i32_1 = arith.constant 0 : i32
    return %c0_i32, %c0_i32_0 : i32, i32
  }
  func.func @transform_22(%arg0: i32) -> (i32, i32) {
    %c0_i32 = arith.constant 0 : i32
    %c0_i32_0 = arith.constant 0 : i32
    %c0_i32_1 = arith.constant 0 : i32
    return %c0_i32, %c0_i32_0 : i32, i32
  }
  func.func @transform_23(%arg0: i32) -> (i32, i32) {
    %c0_i32 = arith.constant 0 : i32
    %c0_i32_0 = arith.constant 0 : i32
    %c0_i32_1 = arith.constant 0 : i32
    return %c0_i32, %c0_i32_0 : i32, i32
  }
  func.func @transform_24(%arg0: i32) -> (i32, i32) {
    %c0_i32 = arith.constant 0 : i32
    %c0_i32_0 = arith.constant 0 : i32
    %c0_i32_1 = arith.constant 0 : i32
    return %c0_i32, %c0_i32_0 : i32, i32
  }
  func.func @transform_25(%arg0: i32) -> (i32, i32, i32) {
    %c0_i32 = arith.constant 0 : i32
    %c0_i32_0 = arith.constant 0 : i32
    %c0_i32_1 = arith.constant 0 : i32
    return %arg0, %c0_i32, %c0_i32_0 : i32, i32, i32
  }
  func.func @transform_26(%arg0: i32) -> (i32, i32, i32, i32) {
    %c0_i32 = arith.constant 0 : i32
    %c0_i32_0 = arith.constant 0 : i32
    %c0_i32_1 = arith.constant 0 : i32
    %c0_i32_2 = arith.constant 0 : i32
    return %arg0, %c0_i32, %c0_i32_0, %c0_i32_1 : i32, i32, i32, i32
  }
  func.func @transform_27(%arg0: i32) -> (i32, i32, i32, i32) {
    %c0_i32 = arith.constant 0 : i32
    %c0_i32_0 = arith.constant 0 : i32
    %c0_i32_1 = arith.constant 0 : i32
    %c0_i32_2 = arith.constant 0 : i32
    return %arg0, %c0_i32, %c0_i32_0, %c0_i32_1 : i32, i32, i32, i32
  }
}

</mosaic_0001>

<bundles_post_ra>
// kernel: tpu_custom_call.1
= control target key start
LH: loop header
LB: loop body
LE: loop exit
PB: predicated region body
PF: predicated region fallthrough
CT: control target
= control target key end

     0   :  { %s4135_s0 = inlined_call_operand.hbm [shape: f32[2,8,32], index: 0, kind: input, shape index: {}]   ;;  %s4136_s1 = inlined_call_operand.vmem [shape: f32[2,16,32], index: 1, kind: input, shape index: {}]   ;;  %s4137_s2 = inlined_call_operand.vmem [shape: f32[2,8,1], index: 2, kind: input, shape index: {}]   ;;  %s4138_s3 = inlined_call_operand.hbm [shape: f32[2,8,8], index: 3, kind: input, shape index: {}]   ;;  %s4139_s4 = inlined_call_operand.hbm [shape: f32[2,8,16], index: 4, kind: input, shape index: {}]   ;;  %s4140_s5 = inlined_call_operand.vmem [shape: f32[32,96], index: 5, kind: input, shape index: {}]   ;;  %s4141_s6 = inlined_call_operand.vmem [shape: f32[1,96], index: 6, kind: input, shape index: {}]   ;;  %s4142_s7 = inlined_call_operand.vmem [shape: f32[32,32], index: 7, kind: input, shape index: {}]   ;;  %s4143_s8 = inlined_call_operand.vmem [shape: f32[1,32], index: 8, kind: input, shape index: {}]   ;;  %s4144_s9 = inlined_call_operand.vmem [shape: f32[1,32], index: 9, kind: input, shape index: {}]   ;;  %s4145_s10 = inlined_call_operand.vmem [shape: f32[1,32], index: 10, kind: input, shape index: {}]   ;;  %s4146_s11 = inlined_call_operand.hbm [shape: f32[32,32], index: 11, kind: input, shape index: {}]   ;;  %s4147_s12 = inlined_call_operand.vmem [shape: f32[1,32], index: 12, kind: input, shape index: {}]   ;;  %s4148_s13 = inlined_call_operand.hbm [shape: f32[32,64], index: 13, kind: input, shape index: {}]   ;;  %s4149_s14 = inlined_call_operand.vmem [shape: f32[1,64], index: 14, kind: input, shape index: {}]   ;;  %s4150_s15 = inlined_call_operand.hbm [shape: f32[32,32], index: 15, kind: input, shape index: {}]   ;;  %s4151_s16 = inlined_call_operand.hbm [shape: f32[1,32], index: 16, kind: input, shape index: {}]   ;;  %s4152_s17 = inlined_call_operand.hbm [shape: f32[1,32], index: 17, kind: input, shape index: {}]   ;;  %s4153_s18 = inlined_call_operand.hbm [shape: f32[1,32], index: 18, kind: input, shape index: {}]   ;;  %s4154_s19 = inlined_call_operand.hbm [shape: f32[32,64], index: 19, kind: input, shape index: {}]   ;;  %s4155_s20 = inlined_call_operand.hbm [shape: f32[1,64], index: 20, kind: input, shape index: {}]   ;;  %s4156_s21 = inlined_call_operand.vmem [shape: f32[64,32], index: 21, kind: input, shape index: {}]   ;;  %s4157_s22 = inlined_call_operand.vmem [shape: f32[1,32], index: 22, kind: input, shape index: {}]   ;;  %s4158_s23 = inlined_call_operand.hbm [shape: f32[1,32], index: 23, kind: input, shape index: {}]   ;;  %s4159_s24 = inlined_call_operand.vmem [shape: f32[1,32], index: 24, kind: input, shape index: {}]   ;;  %s4160_s25 = inlined_call_operand.hbm [shape: f32[2,8,32], index: 25, kind: output, shape index: {0}]   ;;  %s4161_s26 = inlined_call_operand.hbm [shape: f32[2,4,8,8], index: 26, kind: output, shape index: {1}]   ;;  %s4162_s27 = inlined_call_operand.hbm [shape: f32[2,4,8,16], index: 27, kind: output, shape index: {2}]  }
   0x1   :  { %4192 = sst [smem:[#allocation41_spill]] %s4135_s0 }
   0x2   :  { %4193 = sst [smem:[#allocation42_spill]] %s4136_s1 }
   0x3   :  { %4194 = sst [smem:[#allocation43_spill]] %s4137_s2 }
   0x4   :  { %4195 = sst [smem:[#allocation44_spill]] %s4138_s3 }
   0x5   :  { %4196 = sst [smem:[#allocation45_spill]] %s4139_s4 }
   0x6   :  { %4197 = sst [smem:[#allocation46_spill]] %s4140_s5 }
   0x7   :  { %4198 = sst [smem:[#allocation47_spill]] %s4141_s6 }
   0x8   :  { %4199 = sst [smem:[#allocation48_spill]] %s4142_s7 }
   0x9   :  { %4200 = sst [smem:[#allocation49_spill]] %s4143_s8 }
   0xa   :  { %4201 = sst [smem:[#allocation50_spill]] %s4144_s9 }
   0xb   :  { %4202 = sst [smem:[#allocation51_spill]] %s4145_s10 }
   0xc   :  { %4203 = sst [smem:[#allocation52_spill]] %s4146_s11 }
   0xd   :  { %4204 = sst [smem:[#allocation53_spill]] %s4147_s12 }
   0xe   :  { %4205 = sst [smem:[#allocation54_spill]] %s4148_s13 }
   0xf   :  { %4206 = sst [smem:[#allocation55_spill]] %s4149_s14 }
  0x10   :  { %4207 = sst [smem:[#allocation56_spill]] %s4150_s15 }
  0x11   :  { %4208 = sst [smem:[#allocation57_spill]] %s4151_s16 }
  0x12   :  { %4209 = sst [smem:[#allocation58_spill]] %s4152_s17 }
  0x13   :  { %4210 = sst [smem:[#allocation59_spill]] %s4153_s18 }
  0x14   :  { %4211 = sst [smem:[#allocation60_spill]] %s4154_s19 }
  0x15   :  { %4212 = sst [smem:[#allocation61_spill]] %s4157_s22 }
  0x16   :  { %4213 = sst [smem:[#allocation62_spill]] %s4159_s24 }
  0x17   :  { %4214 = sst [smem:[#allocation63_spill]] %s4160_s25 }
  0x18   :  { %4215 = sst [smem:[#allocation64_spill]] %s4161_s26 }
  0x19   :  { %4216 = sst [smem:[#allocation65_spill]] %s4162_s27 }
  0x1a   :  { %33 = vsyncpa [#allocation3], 0 }
  0x1b   :  { %35 = vsyncpa [#allocation3 + $0x1], 0 }
  0x1c   :  { %36 = vsyncpa [#allocation6], 0 }
  0x1d   :  { %38 = vsyncpa [#allocation6 + $0x1], 0 }
  0x1e   :  { %39 = vsyncpa [#allocation9], 0 }
  0x1f   :  { %40 = vsyncpa [#allocation12], 0 }
  0x20   :  { %41 = vsyncpa [#allocation15], 0 }
  0x21   :  { %42 = vsyncpa [#allocation18], 0 }
  0x22   :  { %43 = vsyncpa [#allocation21], 0 }
  0x23   :  { %44 = vsyncpa [#allocation4], 0 }
  0x24   :  { %46 = vsyncpa [#allocation4 + $0x1], 0 }
  0x25   :  { %47 = vsyncpa [#allocation24], 0 }
  0x26   :  { %49 = vsyncpa [#allocation24 + $0x1], 0  ;;  %s3523_s7 = smov 0   ;;  %s3525_s4 = smov 0  }
  0x27   :  { %s3527_s8 = smov 0   ;;  %s3529_s30 = smov 0  }
  0x28 LB: > { %4217 = sst [smem:[#allocation35_spill]] %s3346_s7  ;;  %s3547_s10 = sadd.s32 4294967295, %s3358_s30   ;;  %s3358_s30 = sphi %s3529_s30, %s4282_s30   ;;  %s3354_s8 = sphi %s3527_s8, %s4286_s8   ;;  %s3350_s4 = sphi %s3525_s4, %s4285_s4   ;;  %s3346_s7 = sphi %s3523_s7, %s4284_s7  }
  0x29   : > { %4218 = sst [smem:[#allocation36_spill]] %s3358_s30  ;;  %p2512_p0 = scmp.ge.s32.totalorder %s3358_s30, 1 }
  0x2a   : > { %s4219_s28 = sld [smem:[#allocation52_spill]]  ;;  %p4181_p1 = scmp.eq.s32.totalorder %s3547_s10, 0 }
  0x2b   : > { %p688_p2 = scmp.lt.s32.totalorder %s3358_s30, 3  ;;  %s3360_s1 = smov [#allocation8]  }
  0x2c   : > { %s719_s6 = sshll.u32 %s3360_s1, 4  ;;  %s4221_s15 = sld [smem:[#allocation56_spill]]  ;;  %s720_s6 = int_to_ptr.vmem [resolvable:$true] %s719_s6 }
  0x2d   : > { %p3552_p3 = pnand %p2512_p0, %p688_p2  ;;  %s4223_s17 = sld [smem:[#allocation58_spill]] }
  0x2e   : > { %s3361_s25 = smov [#allocation11]   ;;  %s4170_s27 = smov 128  }
  0x2f   : > { %p2645_p4 = pneg %p3552_p3  ;;  %s753_s24 = sshll.u32 %s3361_s25, 4  ;;  %s754_s24 = int_to_ptr.vmem [resolvable:$true] %s753_s24 }
  0x30   : > { %s717_s0 = sshll.u32 %s4219_s28, 4  ;;  %s4172_s11 = smov 8   ;;  %s718_s0 = int_to_ptr.hbm [resolvable:$true] %s717_s0 }
  0x31   : > { %p3564_p6 = pnand %p2645_p4, %p4181_p1  ;;  %s4224_s19 = sld [smem:[#allocation60_spill]] }
  0x32   : > { %s751_s3 = sshll.u32 %s4221_s15, 4  ;;  %s3364_s28 = smov [#allocation14]   ;;  %s752_s3 = int_to_ptr.hbm [resolvable:$true] %s751_s3 }
  0x33   : > { %s778_s1 = sshll.u32 %s4223_s17, 4  ;;  %s3593_s25 = sadd.s32 1, %s3358_s30   ;;  %s779_s1 = int_to_ptr.hbm [resolvable:$true] %s778_s1 }
  0x34   : > { %2648 = dma.hbm_to_vmem [thread:$0]  (!%p3564_p6), %s718_s0, 512, %s720_s6, [#allocation9], %s4170_s27, %s4170_s27, %s4172_s11  }
  0x35   : > { %2654 = dma.hbm_to_vmem [thread:$0]  (!%p3564_p6), %s752_s3, 512, %s754_s24, [#allocation12], %s4170_s27, %s4170_s27, %s4172_s11  }
  0x36   : > { %s780_s0 = sshll.u32 %s3364_s28, 4  ;;  %s3365_s6 = smov [#allocation17]   ;;  %s781_s0 = int_to_ptr.vmem [resolvable:$true] %s780_s0 }
  0x37   : > { %s801_s5 = sshll.u32 %s4224_s19, 4  ;;  %s803_s24 = sshll.u32 %s3365_s6, 4  ;;  %s802_s5 = int_to_ptr.hbm [resolvable:$true] %s801_s5  ;;  %s804_s24 = int_to_ptr.vmem [resolvable:$true] %s803_s24 }
  0x38   : > { %2660 = dma.hbm_to_vmem [thread:$0]  (!%p3564_p6), %s779_s1, 16, %s781_s0, [#allocation15]  }
  0x39   : > { %2666 = dma.hbm_to_vmem [thread:$0]  (!%p3564_p6), %s802_s5, 512, %s804_s24, [#allocation18], %s4170_s27, %s4170_s27, %s4172_s11  }
  0x3a   : > { %s4171_s3 = sadd.s32 4294967294, %s3358_s30   ;;  %4225 = sst [smem:[#allocation37_spill]] %s3593_s25 }
  0x3b   : > { %s59_s2 = ssub.s32 %s3358_s30, %s3593_s25  ;;  %s62_s1 = sadd.s32 1, %s3354_s8 }
  0x3c   : > { %p60_p7 = scmp.eq.s32.totalorder %s59_s2, 0  ;;  %p69_p8 = scmp.ne.s32.totalorder %s3354_s8, %s3350_s4 }
  0x3d   : > { %p70_p9 = scmp.eq.s32.totalorder %s3358_s30, 0  ;;  %p75_p10 = scmp.ne.s32.totalorder %s3350_s4, %s3346_s7 }
  0x3e   : > { %s3604_s28 = scalar_select %p60_p7, %s3354_s8, %s62_s1  }
  0x3f   : > { %p71_p11 = por %p70_p9, %p69_p8  ;;  %p3608_p12 = por %p4181_p1, %p75_p10 }
  0x40   : > { %4226 = sst [smem:[#allocation38_spill]] %s3604_s28  ;;  %p623_p13 = scmp.eq.s32.totalorder %s3547_s10, 1 }
  0x41   : > { %p629_p0 = scmp.eq.s32.totalorder %s4171_s3, 1  ;;  %p2702_p2 = scmp.lt.s32.totalorder %s3358_s30, 2 }
  0x42   : > { %s4176_s5 = sand.u32 1, %s3354_s8   ;;  %p3617_p4 = por %p623_p13, %p69_p8 }
  0x43   : > { %p3621_p5 = por %p629_p0, %p75_p10  ;;  %s3627_s2 = sshll.u32 %s4176_s5, 3 }
  0x44   : > { %s4228_s6 = scalar_select %p3617_p4, 1, 0 }
  0x45   : > { %s4230_s24 = scalar_select %p3621_p5, 1, 0 }
  0x46   : > { %4229 = sst [smem:[#allocation39_spill]] %s4228_s6  ;;  %s3630_s1 = sshll.u32 %s3358_s30, 3 }
  0x47   : > { %4231 = sst [smem:[#allocation40_spill]] %s4230_s24  ;;  %p3632_p7 = pnand %p2702_p2, %p71_p11 }
  0x48   : > { %s884_s3 = sand.u32 1, %s3358_s30   ;;  %s4233_s17 = sld [smem:[#allocation44_spill]] }
  0x49   : > { %s888_s25 = scalar_lea.vmem [#allocation5], %s3627_s2  ;;  %s3642_s5 = scalar_lea.sflag [#allocation6], %s884_s3 }
  0x4a   : > { %s896_s24 = sshll.u32 %s888_s25, 4  ;;  %p2972_p9 = pneg %p3632_p7  ;;  %s897_s24 = int_to_ptr.vmem [resolvable:$true] %s896_s24 }
  0x4e   : > { %s892_s19 = scalar_lea.hbm %s4233_s17, %s3630_s1 }
  0x4f   : > { %s894_s28 = sshll.u32 %s892_s19, 4  ;;  %s2975_s19 = scalar_lea.hbm %s4233_s17, 16  ;;  %s895_s28 = int_to_ptr.hbm [resolvable:$true] %s894_s28 }
  0x50   : > { %s2968_s7 = sshra.s32 %s895_s28, 4  ;;  %s2969_s7 = int_to_ptr.hbm [resolvable:$true] %s2968_s7 }
  0x51   : > { %s2970_s26 = scalar_lea.hbm %s2969_s7, 8  ;;  %p2976_p13 = scmp.lt.s32.totalorder %s2969_s7, %s4233_s17 }
  0x52   : > { %p2971_p8 = scmp.ne.s32.totalorder %s2969_s7, %s2970_s26  ;;  %p2977_p0 = scmp.lt.s32.totalorder %s2975_s19, %s2970_s26 }
  0x54   : > { %p2973_p10 = pnand %p2972_p9, %p2971_p8  ;;  %p2978_p2 = por %p2977_p0, %p2976_p13 }
  0x56   : > { %p2974_p11 = pneg %p2973_p10 }
  0x58   : > { %p2979_p1 = pnand %p2978_p2, %p2974_p11 }
  0x5a   : > { %2982 = shalt.err (!%p2979_p1)
}
  0x5b   : > { %2679 = dma.hbm_to_vmem [thread:$0]  (!%p3632_p7), %s895_s28, 128, %s897_s24, %s3642_s5  }
  0x5c   : > { %s4234_s13 = sld [smem:[#allocation54_spill]]  ;;  %s3366_s30 = smov [#allocation10]  }
  0x5d   : > { %s736_s15 = sshll.u32 %s3366_s30, 4  ;;  %s4235_s16 = sld [smem:[#allocation57_spill]]  ;;  %s737_s15 = int_to_ptr.vmem [resolvable:$true] %s736_s15 }
  0x5e   : > { %s4236_s11 = smov 8   ;;  %s4237_s25 = smov 128  }
  0x5f   : > { %s3367_s28 = smov [#allocation13]   ;;  %s4238_s18 = sld [smem:[#allocation59_spill]] }
  0x60   : > { %s768_s24 = sshll.u32 %s3367_s28, 4  ;;  %s816_s26 = sshll.u32 %s4155_s20, 4  ;;  %s769_s24 = int_to_ptr.vmem [resolvable:$true] %s768_s24  ;;  %s817_s26 = int_to_ptr.hbm [resolvable:$true] %s816_s26 }
  0x61   : > { %s3369_s17 = smov [#allocation19]   ;;  %s3370_s28 = smov [#allocation20]  }
  0x62   : > { %s734_s22 = sshll.u32 %s4234_s13, 4  ;;  %s3368_s13 = smov [#allocation16]   ;;  %s735_s22 = int_to_ptr.hbm [resolvable:$true] %s734_s22 }
  0x63   : > { %s766_s19 = sshll.u32 %s4235_s16, 4  ;;  %s4239_s30 = sld [smem:[#allocation41_spill]]  ;;  %s767_s19 = int_to_ptr.hbm [resolvable:$true] %s766_s19 }
  0x64   : > { %2651 = dma.hbm_to_vmem [thread:$0]  (!%p3564_p6), %s735_s22, 512, %s737_s15, [#allocation9], %s4237_s25, %s4237_s25, %s4236_s11  }
  0x65   : > { %s790_s3 = sshll.u32 %s4238_s18, 4  ;;  %s792_s22 = sshll.u32 %s3368_s13, 4  ;;  %s791_s3 = int_to_ptr.hbm [resolvable:$true] %s790_s3  ;;  %s793_s22 = int_to_ptr.vmem [resolvable:$true] %s792_s22 }
  0x66   : > { %2657 = dma.hbm_to_vmem [thread:$0]  (!%p3564_p6), %s767_s19, 16, %s769_s24, [#allocation12]  }
  0x67   : > { %2663 = dma.hbm_to_vmem [thread:$0]  (!%p3564_p6), %s791_s3, 16, %s793_s22, [#allocation15]  }
  0x68   : > { %s818_s15 = sshll.u32 %s3369_s17, 4  ;;  %s834_s19 = sshll.u32 %s4158_s23, 4  ;;  %s819_s15 = int_to_ptr.vmem [resolvable:$true] %s818_s15  ;;  %s835_s19 = int_to_ptr.hbm [resolvable:$true] %s834_s19 }
  0x69   : > { %2669 = dma.hbm_to_vmem [thread:$0]  (!%p3564_p6), %s817_s26, 16, %s819_s15, [#allocation18]  }
  0x6a   : > { %s836_s24 = sshll.u32 %s3370_s28, 4  ;;  %s4240_s16 = smov %s4239_s30  ;;  %s837_s24 = int_to_ptr.vmem [resolvable:$true] %s836_s24 }
  0x6b   : > { %s858_s7 = scalar_lea.hbm %s4239_s30, %s3630_s1  ;;  %s854_s22 = scalar_lea.vmem [#allocation2], %s3627_s2 }
  0x6c   : > { %2672 = dma.hbm_to_vmem [thread:$0]  (!%p3564_p6), %s835_s19, 16, %s837_s24, [#allocation21]  }
  0x6d   : > { %s860_s3 = sshll.u32 %s858_s7, 4  ;;  %s862_s17 = sshll.u32 %s854_s22, 4  ;;  %s861_s3 = int_to_ptr.hbm [resolvable:$true] %s860_s3  ;;  %s863_s17 = int_to_ptr.vmem [resolvable:$true] %s862_s17 }
  0x6e   : > { %s4241_s11 = sand.u32 1, %s3354_s8   ;;  %s3148_s18 = sshra.s32 %s861_s3, 4  ;;  %s3149_s18 = int_to_ptr.hbm [resolvable:$true] %s3148_s18 }
  0x6f   : > { %s851_s25 = scalar_lea.sflag [#allocation3], %s4241_s11  ;;  %s3150_s26 = scalar_lea.hbm %s3149_s18, 8 }
  0x70   : > { %p3151_p1 = scmp.ne.s32.totalorder %s3149_s18, %s3150_s26  ;;  %s3155_s9 = scalar_lea.hbm %s4240_s16, 16 }
  0x71   : > { %p3156_p6 = scmp.lt.s32.totalorder %s3149_s18, %s4240_s16  ;;  %p3157_p11 = scmp.lt.s32.totalorder %s3155_s9, %s3150_s26 }
  0x72   : > { %p3153_p8 = pnand %p3151_p1, %p2972_p9 }
  0x73   : > { %p3158_p13 = por %p3157_p11, %p3156_p6 }
  0x74   : > { %p3154_p10 = pneg %p3153_p8 }
  0x76   : > { %p3159_p0 = pnand %p3158_p13, %p3154_p10 }
  0x78   : > { %3162 = shalt.err (!%p3159_p0)
}
  0x79   : > { %2676 = dma.hbm_to_vmem [thread:$0]  (!%p3632_p7), %s861_s3, 128, %s863_s17, %s851_s25  }
  0x7a   : > { %s4242_s30 = sld [smem:[#allocation45_spill]]  ;;  %s907_s15 = scalar_lea.vmem [#allocation7], %s3627_s2 }
  0x7b   : > { %s915_s28 = sshll.u32 %s907_s15, 4  ;;  %s916_s28 = int_to_ptr.vmem [resolvable:$true] %s915_s28 }
  0x80   : > { %s4243_s22 = smov %s4242_s30  ;;  %s911_s7 = scalar_lea.hbm %s4242_s30, %s3630_s1 }
  0x81   : > { %s913_s11 = sshll.u32 %s911_s7, 4  ;;  %s3185_s3 = scalar_lea.hbm %s4243_s22, 16  ;;  %s914_s11 = int_to_ptr.hbm [resolvable:$true] %s913_s11 }
  0x82   : > { %s3178_s18 = sshra.s32 %s914_s11, 4  ;;  %s3179_s18 = int_to_ptr.hbm [resolvable:$true] %s3178_s18 }
  0x83   : > { %s3180_s26 = scalar_lea.hbm %s3179_s18, 8  ;;  %p3186_p10 = scmp.lt.s32.totalorder %s3179_s18, %s4243_s22 }
  0x84   : > { %p3181_p2 = scmp.ne.s32.totalorder %s3179_s18, %s3180_s26  ;;  %p3187_p6 = scmp.lt.s32.totalorder %s3185_s3, %s3180_s26 }
  0x86   : > { %p3183_p1 = pnand %p3181_p2, %p2972_p9  ;;  %p3188_p11 = por %p3187_p6, %p3186_p10 }
  0x88   : > { %p3184_p8 = pneg %p3183_p1 }
  0x8a   : > { %p3189_p13 = pnand %p3188_p11, %p3184_p8 }
  0x8c   : > { %3192 = shalt.err (!%p3189_p13)
}
  0x8d   : > { %2682 = dma.hbm_to_vmem [thread:$0]  (!%p3632_p7), %s914_s11, 128, %s916_s28, %s3642_s5  }
  0x8e   : > { %924 = sbr.rel (%p3552_p3) target bundleno = 3469 (0xd8d), region = 120  ;;  %s3724_s2 = sand.u32 (!%p3552_p3), 1, %s3350_s4  }
  0x8f   : > { %s3727_s1 = sshll.u32 (!%p3552_p3), %s3724_s2, 3  ;;  %s927_s24 = scalar_lea.sflag (!%p3552_p3), [#allocation3], %s3724_s2 }
  0x90   : > { %s930_s13 = scalar_lea.vmem (!%p3552_p3), [#allocation2], %s3727_s1 }
  0x93   : > { %3309 = dma.done.wait (%p3608_p12), %s927_s24, 128  }
  0x94   : > { %3311 = vsyncadd (%p3608_p12), %s927_s24, 4294967168  ;;  %s4185_s27 = sand.u32 1, %s3547_s10   ;;  %s940_s5 = scalar_lea.vmem [#allocation5], %s3727_s1 }
  0x95   : > { %s937_s29 = scalar_lea.sflag [#allocation6], %s4185_s27 }
  0x96   : > { %3313 = dma.done.wait (%p3608_p12), %s937_s29, 256  }
  0x97   : > { %3315 = vsyncadd (%p3608_p12), %s937_s29, 4294967040  ;;  %s950_s6 = scalar_lea.vmem [#allocation7], %s3727_s1  ;;  %p4244_p3 = scmp.eq.s32.totalorder %s3547_s10, 0 }
  0x99   : > { %3317 = dma.done.wait (%p4244_p3), [#allocation9], 1024   ;;  %p4245_p7 = pmov %p4244_p3 }
  0x9a   : > { %p4246_p9 = pmov %p4244_p3 }
  0x9b   : > { %3319 = vsyncadd (%p4245_p7), [#allocation9], 4294966272 }
  0x9c   : > { %3321 = dma.done.wait (%p4246_p9), [#allocation12], 528   ;;  %p4247_p0 = pmov %p4244_p3 }
  0x9e   : > { %3323 = vsyncadd (%p4247_p0), [#allocation12], 4294966768  ;;  %p4248_p2 = pmov %p4247_p0 }
  0x9f   : > { %p4249_p1 = pmov %p4247_p0 }
  0xa0   : > { %3325 = dma.done.wait (%p4248_p2), [#allocation15], 32  }
  0xa1   : > { %3327 = vsyncadd (%p4249_p1), [#allocation15], 4294967264  ;;  %p4250_p12 = pmov %p4247_p0 }
  0xa2   : > { %p4251_p8 = pmov %p4247_p0 }
  0xa3   : > { %3329 = dma.done.wait (%p4250_p12), [#allocation18], 528  }
  0xa4   : > { %3331 = vsyncadd (%p4251_p8), [#allocation18], 4294966768  ;;  %p4252_p10 = pmov %p4247_p0 }
  0xa5   : > { %p4253_p6 = pmov %p4247_p0 }
  0xa6   : > { %3333 = dma.done.wait (%p4252_p10), [#allocation21], 16  }
  0xa7   : > { %3335 = vsyncadd (%p4253_p6), [#allocation21], 4294967280  ;;  %s4254_s7 = sld [smem:[#allocation46_spill]]  ;;  %vm1117_vm0 = vcmask 261120   ;;  %v3776_v4 = vld [vmem:[%s930_s13] sm:$0xff]  ;;  %s3371_s24 = smov 104  }
  0xa8   : > { %s4256_s25 = sld [smem:[#allocation47_spill]]  ;;  %s3372_s29 = smov 120   ;;  %vm1153_vm1 = vcmask 64512   ;;  %v1141_v15 = vld [vmem:[%s940_s5] sm:$0xff]  ;;  %v3375_v17 = vmov 0.0  }
  0xa9   : > { %s3373_s13 = smov 112   ;;  %s3374_s0 = smov 96   ;;  %vm1142_vm2 = vcmp.gt.f32.partialorder %v1141_v15, 0.0 }
  0xaa   : > { %v1143_v18 = vsel %vm1142_vm2, -1e+30, %v3375_v17  ;;  %s3376_s5 = smov 64   ;;  %s4190_s30 = sshll.u32 %s3724_s2, 5 }
  0xab   : > { %s4186_s15 = smov 16   ;;  %s4188_s28 = smov 8  }
  0xac   : > { %s4187_s18 = smov 24   ;;  %s4257_s19 = sld [smem:[#allocation48_spill]] }
  0xad   : > { %s4255_s11 = smov %s4254_s7  ;;  %v1112_v0 = vld [vmem:[%s4254_s7 + $0x18] sm:$0xff]  ;;  %s3844_s7 = scalar_lea.vmem [#allocation23], %s4190_s30 }
  0xae   : > { %v1111_v1 = vld [vmem:[%s4255_s11 + $0x10] sm:$0xff]  ;;  %1133 = vmatpush.msra.mxu0 %v1112_v0  ;;  %v1110_v2 = vld [vmem:[%s4255_s11 + $0x8] sm:$0xff]  ;;  %v1109_v3 = vld [vmem:[%s4255_s11] sm:$0xff]  ;;  %p1096_p11 = scmp.lt.s32.totalorder %s3547_s10, 1  ;;  %s4261_s14 = sld [smem:[#allocation55_spill]] }
  0xaf   : > { %v2795_v5 = vld [vmem:[%s4256_s25] ss:$0 sm:$0xff]  ;;  %s4264_s12 = sld [smem:[#allocation53_spill]]  ;;  %s2595_s17 = sshll.u32 %s3547_s10, 5 }
  0xb0   : > { %1134 = vmatpush.msra.mxu0 %v1111_v1  ;;  %s1097_s9 = scalar_select %p1096_p11, %s3547_s10, 1 }
  0xb1   : > { %s4271_s26 = sld [smem:[#allocation64_spill]] }
  0xb2   : > { %1135 = vmatpush.msra.mxu0 %v1110_v2  ;;  %s2547_s3 = sshll.u32 %s1097_s9, 3 }
  0xb4   : > { %1136 = vmatpush.msra.mxu0 %v1109_v3 }
  0xb5   : > { %2548 = vmatmul.msk.f32.vlgmr.msra.gmra.mxu0 %vm1117_vm0, %v3776_v4 }
  0xb7   : > { %s2201_s27 = scalar_lea.hbm %s4271_s26, %s2595_s17  ;;  %s3228_s11 = scalar_lea.hbm %s4271_s26, 64 }
 0x132   : > { %v1138_v6 = vpop.f32.mrf.mxu0 }
 0x133   : > { %v3783_v7 = vadd.f32 %v2795_v5, %v1138_v6 }
 0x135   : > { %1149 = vrot.lane.b32.xlu1 %v3783_v7, %s3371_s24  ;;  %1145 = vrot.lane.b32.xlu0 %v3783_v7, %s3372_s29 }
 0x13d   : > { %1147 = vrot.lane.b32.xlu0 %v3783_v7, %s3373_s13 }
 0x1a7   : > { %v3791_v8 = vpop.permute.xlu1 %1149  ;;  %v3793_v9 = vpop.permute.xlu0 %1145 }
 0x1a8   : > { %1230 = vrot.lane.b32.xlu0 %v3791_v8, %s3374_s0  ;;  %1178 = vrot.lane.b32.xlu1 %v3793_v9, %s3374_s0 }
 0x1af   : > { %v3799_v10 = vpop.permute.xlu0 %1147 }
 0x1b0   : > { %1204 = vrot.lane.b32.xlu2 %v3799_v10, %s3374_s0  ;;  %v2768_v54 = vpack.i.bf16 %v3799_v10, %v3793_v9 }
 0x1b8   : > { %1151 = vrot.lane.b32.xlu2 %v3783_v7, %s3374_s0 }
 0x20a   : > { %v1205_v11 = vpop.permute.xlu2 %1204 }
 0x20b   : > { %2553 = vmatpush.xpose.msk.msra.mxu3 %vm1153_vm1, %v1205_v11 }
 0x20e   : > { %2554 = vmatmul.msk.f32.vlgmr.msra.gmra.mxu3 %vm1153_vm1, %v3799_v10 }
 0x212   : > { %v1152_v12 = vpop.permute.xlu2 %1151 }
 0x213   : > { %2549 = vmatpush.xpose.msk.msra.mxu1 %vm1153_vm1, %v1152_v12 }
 0x216   : > { %2550 = vmatmul.msk.f32.vlgmr.msra.gmra.mxu1 %vm1153_vm1, %v3783_v7 }
 0x21a   : > { %v1179_v13 = vpop.permute.xlu1 %1178  ;;  %v1231_v14 = vpop.permute.xlu0 %1230 }
 0x21b   : > { %2551 = vmatpush.xpose.msk.msra.mxu2 %vm1153_vm1, %v1179_v13  ;;  %2555 = vmatpush.xpose.msk.msrb.mxu1 %vm1153_vm1, %v1231_v14 }
 0x21e   : > { %2552 = vmatmul.msk.f32.vlgmr.msra.gmra.mxu2 %vm1153_vm1, %v3793_v9  ;;  %2556 = vmatmul.msk.f32.vlgmr.msrb.gmra.mxu1 %vm1153_vm1, %v3791_v8 }
 0x291   : > { %v1227_v16 = vpop.f32.mrf.mxu3 }
 0x292   : > { %v1258_v19 = vmul.f32 0.35355338, %v1227_v16 }
 0x293   : > { %v1175_v20 = vpop.f32.mrf.mxu1 }
 0x294   : > { %v1262_v21 = vadd.f32 %v1258_v19, %v1143_v18  ;;  %v1256_v22 = vmul.f32 0.35355338, %v1175_v20 }
 0x296   : > { %v1270_v23 = vsel %vm1153_vm1, %v1262_v21, -inf  ;;  %v1260_v24 = vadd.f32 %v1256_v22, %v1143_v18 }
 0x297   : > { %1271 = vmax.xlane.f32.xlu2 %v1270_v23 }
 0x298   : > { %v1264_v27 = vsel %vm1153_vm1, %v1260_v24, -inf }
 0x29b   : > { %v1253_v25 = vpop.f32.mrf.mxu1 }
 0x29c   : > { %v1259_v26 = vmul.f32 0.35355338, %v1253_v25 }
 0x29e   : > { %v1263_v28 = vadd.f32 %v1259_v26, %v1143_v18 }
 0x29f   : > { %1265 = vmax.xlane.f32.xlu2 %v1264_v27 }
 0x2a0   : > { %v1273_v29 = vsel %vm1153_vm1, %v1263_v28, -inf }
 0x2a1   : > { %v1201_v30 = vpop.f32.mrf.mxu2  ;;  %1274 = vmax.xlane.f32.xlu0 %v1273_v29 }
 0x2a2   : > { %v1257_v31 = vmul.f32 0.35355338, %v1201_v30 }
 0x2a4   : > { %v1261_v32 = vadd.f32 %v1257_v31, %v1143_v18 }
 0x2a6   : > { %v1267_v33 = vsel %vm1153_vm1, %v1261_v32, -inf }
 0x2a7   : > { %1268 = vmax.xlane.f32.xlu1 %v1267_v33 }
 0x30a   : > { %v1272_v34 = vpop.xlane.xlu2 %1271 }
 0x30b   : > { %v1278_v35 = vsub.f32 %v1262_v21, %v1272_v34 }
 0x30d   : > { %v1284_v36 = vmul.f32 1.442695, %v1278_v35 }
 0x30f   : > { %2808 = vpow2.f32 %v1284_v36 }
 0x312   : > { %v1266_v37 = vpop.xlane.xlu2 %1265 }
 0x313   : > { %v1276_v41 = vsub.f32 %v1260_v24, %v1266_v37 }
 0x314   : > { %v1275_v38 = vpop.xlane.xlu0 %1274 }
 0x315   : > { %v2809_v39 = vpop.eup %2808  ;;  %v1279_v40 = vsub.f32 %v1263_v28, %v1275_v38  ;;  %v1280_v44 = vmul.f32 1.442695, %v1276_v41 }
 0x316   : > { %v1294_v42 = vsel %vm1153_vm1, %v2809_v39, 0.0 }
 0x317   : > { %v1286_v43 = vmul.f32 1.442695, %v1279_v40  ;;  %1295 = vadd.xlane.f32.xlu2 %v1294_v42 }
 0x319   : > { %2810 = vpow2.f32 %v1286_v43 }
 0x31a   : > { %v1269_v45 = vpop.xlane.xlu1 %1268  ;;  %2812 = vpow2.f32 %v1280_v44 }
 0x31b   : > { %v1277_v46 = vsub.f32 %v1261_v32, %v1269_v45 }
 0x31d   : > { %v1282_v47 = vmul.f32 1.442695, %v1277_v46 }
 0x31f   : > { %v3825_v48 = vpop.eup %2810  ;;  %2814 = vpow2.f32 %v1282_v47 }
 0x320   : > { %v1297_v49 = vsel %vm1153_vm1, %v3825_v48, 0.0  ;;  %v3829_v50 = vpop.eup %2812 }
 0x321   : > { %1298 = vadd.xlane.f32.xlu0 %v1297_v49  ;;  %v1288_v53 = vsel %vm1153_vm1, %v3829_v50, 0.0  ;;  %v1488_v49 = vld [vmem:[%s4257_s19 + $0x18] sm:$0xff] }
 0x325   : > { %v3831_v51 = vpop.eup %2814 }
 0x326   : > { %v1291_v52 = vsel %vm1153_vm1, %v3831_v51, 0.0 }
 0x327   : > { %1292 = vadd.xlane.f32.xlu1 %v1291_v52  ;;  %v1485_v52 = vld [vmem:[%s4257_s19] sm:$0xff] }
 0x329   : > { %1289 = vadd.xlane.f32.xlu0 %v1288_v53 }
 0x32f   : > { %1442 = vrot.lane.b32.xlu2 %v3791_v8, %s3376_s5 }
 0x33d   : > { %1364 = vrot.lane.b32.xlu0 %v3783_v7, %s3376_s5 }
 0x340   : > { %2769 = vrot.lane.b32.xlu1 %v2768_v54, %s3376_s5  ;;  %s4259_s5 = sld [smem:[#allocation43_spill]] }
 0x38a   : > { %v1296_v55 = vpop.xlane.xlu2 %1295 }
 0x38b   : > { %2816 = vrcp.f32 %v1296_v55  ;;  %v1339_v60 = vand.u32 2147483648, %v1296_v55  ;;  %v1337_v62 = vand.u32 2147483647, %v1296_v55  ;;  %vm1333_vm4 = vweird.f32 %v1296_v55 }
 0x38d   : > { %v1340_v0 = vor.u32 1.1754944e-38, %v1339_v60  ;;  %vm1338_vm6 = vcmp.eq.f32.partialorder %v1337_v62, 8.507059e+37 }
 0x391   : > { %v2817_v56 = vpop.eup %2816 }
 0x392   : > { %v1329_v57 = vmul.f32 %v2817_v56, %v1296_v55  ;;  %vm1334_vm3 = vweird.f32 %v2817_v56  ;;  %v1443_v45 = vpop.permute.xlu2 %1442 }
 0x393   : > { %vm1335_vm5 = vmor %vm1333_vm4, %vm1334_vm3 }
 0x394   : > { %v1330_v58 = vsub.f32 1.0, %v1329_v57  ;;  %v1299_v59 = vpop.xlane.xlu0 %1298 }
 0x395   : > { %2818 = vrcp.f32 %v1299_v59  ;;  %v1353_v10 = vand.u32 2147483648, %v1299_v59  ;;  %v1351_v12 = vand.u32 2147483647, %v1299_v59  ;;  %vm1347_vm8 = vweird.f32 %v1299_v59 }
 0x396   : > { %v1331_v61 = vmul.f32 %v2817_v56, %v1330_v58 }
 0x397   : > { %v1354_v18 = vor.u32 1.1754944e-38, %v1353_v10  ;;  %vm1352_vm10 = vcmp.eq.f32.partialorder %v1351_v12, 8.507059e+37 }
 0x398   : > { %v1332_v63 = vadd.f32 %v2817_v56, %v1331_v61 }
 0x39a   : > { %v1336_v1 = vsel %vm1335_vm5, %v2817_v56, %v1332_v63  ;;  %v1293_v2 = vpop.xlane.xlu1 %1292  ;;  %vm1481_vm5 = vcmask 130048  }
 0x39b   : > { %v2819_v3 = vpop.eup %2818  ;;  %v1341_v5 = vsel %vm1338_vm6, %v1340_v0, %v1336_v1  ;;  %2820 = vrcp.f32 %v1293_v2  ;;  %v1323_v23 = vand.u32 2147483647, %v1293_v2  ;;  %v1325_v24 = vand.u32 2147483648, %v1293_v2 }
 0x39c   : > { %v1343_v6 = vmul.f32 %v2819_v3, %v1299_v59  ;;  %v1290_v7 = vpop.xlane.xlu0 %1289  ;;  %v1358_v8 = vmul.f32 %v2809_v39, %v1341_v5  ;;  %vm1348_vm7 = vweird.f32 %v2819_v3  ;;  %vm1319_vm12 = vweird.f32 %v1293_v2  ;;  %v1595_v5 = vld [vmem:[#allocation10 + $0x10] sm:$0xff] }
 0x39d   : > { %2822 = vrcp.f32 %v1290_v7  ;;  %vm1349_vm9 = vmor %vm1347_vm8, %vm1348_vm7  ;;  %v1311_v28 = vand.u32 2147483648, %v1290_v7  ;;  %v1309_v31 = vand.u32 2147483647, %v1290_v7  ;;  %v1326_v32 = vor.u32 1.1754944e-38, %v1325_v24  ;;  %v1563_v24 = vld [vmem:[#allocation8 + $0x8] sm:$0xff] }
 0x39e   : > { %v1344_v9 = vsub.f32 1.0, %v1343_v6  ;;  %1362 = vst.msk [vmem:[%s3844_s7 + $0x10] sm:$0xff] %vm1153_vm1, %v1358_v8  ;;  %vm1324_vm15 = vcmp.eq.f32.partialorder %v1323_v23, 8.507059e+37  ;;  %vm1305_vm2 = vweird.f32 %v1290_v7  ;;  %vm1483_vm6 = vcmask 195584   ;;  %v1564_v23 = vld [vmem:[#allocation8 + $0x10] sm:$0xff] }
 0x39f   : > { %v1312_v35 = vor.u32 1.1754944e-38, %v1311_v28  ;;  %vm1310_vm4 = vcmp.eq.f32.partialorder %v1309_v31, 8.507059e+37  ;;  %v3380_v1 = vmov 32.0   ;;  %v3381_v6 = vmov 0  }
 0x3a0   : > { %v1345_v11 = vmul.f32 %v2819_v3, %v1344_v9  ;;  %2824 = vrcp.f32 %v3380_v1  ;;  %2773 = vset.pattern.permute.xlu1 %v3381_v6  ;;  %2794 = vset.pattern.permute.xlu0 %v3381_v6 }
 0x3a1   : > { %v2821_v13 = vpop.eup %2820 }
 0x3a2   : > { %v1346_v14 = vadd.f32 %v2819_v3, %v1345_v11  ;;  %v1315_v15 = vmul.f32 %v2821_v13, %v1293_v2  ;;  %vm1320_vm11 = vweird.f32 %v2821_v13 }
 0x3a3   : > { %v2823_v16 = vpop.eup %2822  ;;  %vm1321_vm14 = vmor %vm1319_vm12, %vm1320_vm11 }
 0x3a4   : > { %v1350_v19 = vsel %vm1349_vm9, %v2819_v3, %v1346_v14  ;;  %v1316_v20 = vsub.f32 1.0, %v1315_v15  ;;  %v1301_v21 = vmul.f32 %v2823_v16, %v1290_v7  ;;  %vm1306_vm13 = vweird.f32 %v2823_v16  ;;  %v1596_v3 = vld [vmem:[#allocation10 + $0x18] sm:$0xff] }
 0x3a5   : > { %v1355_v22 = vsel %vm1352_vm10, %v1354_v18, %v1350_v19  ;;  %vm1307_vm3 = vmor %vm1305_vm2, %vm1306_vm13  ;;  %1619 = vmatpush.msrb.mxu0 %v1596_v3 }
 0x3a6   : > { %v1317_v25 = vmul.f32 %v2821_v13, %v1316_v20  ;;  %v1302_v26 = vsub.f32 1.0, %v1301_v21  ;;  %v1359_v27 = vmul.f32 %v3825_v48, %v1355_v22  ;;  %v2825_v7 = vpop.eup %2824  ;;  %v1565_v22 = vld [vmem:[#allocation8 + $0x18] sm:$0xff] }
 0x3a7   : > { %1620 = vmatpush.msrb.mxu0 %v1595_v5  ;;  %v1523_v10 = vmul.f32 32.0, %v2825_v7  ;;  %vm1527_vm7 = vweird.f32 %v2825_v7 }
 0x3a8   : > { %v1318_v29 = vadd.f32 %v2821_v13, %v1317_v25  ;;  %v1303_v30 = vmul.f32 %v2823_v16, %v1302_v26  ;;  %1363 = vst.msk [vmem:[%s3844_s7 + $0x18] sm:$0xff] %vm1153_vm1, %v1359_v27  ;;  %v1562_v25 = vld [vmem:[#allocation8] sm:$0xff]  ;;  %v2799_v26 = vld [vmem:[%s4261_s14] ss:$0 sm:$0xff] }
 0x3a9   : > { %v1524_v11 = vsub.f32 1.0, %v1523_v10 }
 0x3aa   : > { %v1304_v33 = vadd.f32 %v2823_v16, %v1303_v30  ;;  %v1322_v34 = vsel %vm1321_vm14, %v2821_v13, %v1318_v29 }
 0x3ab   : > { %v1327_v36 = vsel %vm1324_vm15, %v1326_v32, %v1322_v34  ;;  %v1525_v13 = vmul.f32 %v2825_v7, %v1524_v11 }
 0x3ac   : > { %v1308_v37 = vsel %vm1307_vm3, %v2823_v16, %v1304_v33  ;;  %v1357_v38 = vmul.f32 %v3831_v51, %v1327_v36  ;;  %v1486_v51 = vld [vmem:[%s4257_s19 + $0x8] sm:$0xff] }
 0x3ad   : > { %v1313_v39 = vsel %vm1310_vm4, %v1312_v35, %v1308_v37  ;;  %v1526_v14 = vadd.f32 %v2825_v7, %v1525_v13 }
 0x3ae   : > { %v1356_v40 = vmul.f32 %v3829_v50, %v1313_v39  ;;  %1361 = vst.msk [vmem:[%s3844_s7 + $0x8] sm:$0xff] %vm1153_vm1, %v1357_v38  ;;  %v1487_v50 = vld [vmem:[%s4257_s19 + $0x10] sm:$0xff] }
 0x3af   : > { %v1365_v41 = vpop.permute.xlu0 %1364  ;;  %v3895_v15 = vsel %vm1527_vm7, %v2825_v7, %v1526_v14 }
 0x3b0   : > { %1385 = vmatpush.msrb.mxu2 %v1365_v41  ;;  %1360 = vst.msk [vmem:[%s3844_s7] sm:$0xff] %vm1153_vm1, %v1356_v40 }
 0x3b1   : > { %2557 = vmatmul.msk.f32.vlgmr.msrb.gmra.mxu2 %vm1153_vm1, %v1356_v40 }
 0x3b2   : > { %v2770_v42 = vpop.permute.xlu1 %2769  ;;  %1508 = vmatpush.msra.mxu2 %v1488_v49  ;;  %v2800_v49 = vld [vmem:[%s4264_s12] ss:$0 sm:$0xff] }
 0x3b3   : > { %v2772_v43 = vunpack.i.h.bf16 %v2770_v42  ;;  %v2771_v44 = vunpack.i.l.bf16 %v2770_v42 }
 0x3b4   : > { %1509 = vmatpush.msra.mxu2 %v1487_v50 }
 0x3b5   : > { %1411 = vmatpush.msrb.mxu3 %v2771_v44  ;;  %1437 = vmatpush.msra.mxu1 %v2772_v43 }
 0x3b6   : > { %2558 = vmatmul.msk.f32.vlgmr.msrb.gmra.mxu3 %vm1153_vm1, %v1357_v38  ;;  %2559 = vmatmul.msk.f32.vlgmr.msra.gmra.mxu1 %vm1153_vm1, %v1358_v8  ;;  %v1593_v8 = vld [vmem:[#allocation10] sm:$0xff] }
 0x3b7   : > { %1463 = vmatpush.msrb.mxu1 %v1443_v45  ;;  %1510 = vmatpush.msra.mxu2 %v1486_v51 }
 0x3b8   : > { %1585 = vmatpush.msra.mxu3 %v1565_v22 }
 0x3b9   : > { %1511 = vmatpush.msra.mxu2 %v1485_v52 }
 0x3ba   : > { %1586 = vmatpush.msra.mxu3 %v1564_v23 }
 0x3bc   : > { %1587 = vmatpush.msra.mxu3 %v1563_v24 }
 0x3be   : > { %2560 = vmatmul.msk.f32.vlgmr.msrb.gmra.mxu1 %vm1153_vm1, %v1359_v27  ;;  %1588 = vmatpush.msra.mxu3 %v1562_v25 }
 0x433   : > { %v1439_v46 = vpop.f32.mrf.mxu1 }
 0x434   : > { %1473 = vrot.lane.b32.xlu2 %v1439_v46, %s4186_s15  ;;  %v1387_v54 = vpop.f32.mrf.mxu2  ;;  %s4258_s15 = sld [smem:[#allocation49_spill]] }
 0x439   : > { %v1413_v47 = vpop.f32.mrf.mxu3 }
 0x43a   : > { %1469 = vrot.lane.b32.xlu1 %v1413_v47, %s4188_s28  ;;  %v2796_v60 = vld [vmem:[%s4258_s15] ss:$0 sm:$0xff]  ;;  %s2594_s28 = sshll.u32 %s1097_s9, 4  ;;  %s4260_s15 = sld [smem:[#allocation42_spill]] }
 0x43b   : > { %v1465_v48 = vpop.f32.mrf.mxu1  ;;  %s4269_s9 = sld [smem:[#allocation61_spill]] }
 0x440   : > { %s1100_s30 = scalar_lea.vmem %s4260_s15, %s2594_s28 }
 0x441   : > { %v1106_v9 = vld [vmem:[%s1100_s30] sm:$0xff]  ;;  %v1107_v12 = vld [vmem:[%s1100_s30 + $0x8] sm:$0xff] }
 0x442   : > { %1477 = vrot.lane.b32.xlu1 %v1465_v48, %s4187_s18  ;;  %s1104_s18 = scalar_lea.vmem %s4259_s5, %s2547_s3  ;;  %s4262_s3 = sld [smem:[#allocation50_spill]] }
 0x443   : > { %v1108_v2 = vld [vmem:[%s1104_s18] sm:$0xff]  ;;  %s4263_s5 = sld [smem:[#allocation51_spill]] }
 0x448   : > { %v2797_v40 = vld [vmem:[%s4262_s3] ss:$0 sm:$0xff] }
 0x449   : > { %v2798_v42 = vld [vmem:[%s4263_s5] ss:$0 sm:$0xff] }
 0x44a   : > { %1558 = vperm.xlu1 %2773, %v1108_v2  }
 0x48e   : > { %v1474_v56 = vpop.permute.xlu2 %1473 }
 0x4ac   : > { %v1470_v53 = vpop.permute.xlu1 %1469 }
 0x4ad   : > { %v1480_v55 = vsel %vm1153_vm1, %v1387_v54, %v1470_v53 }
 0x4ae   : > { %v1482_v58 = vsel %vm1481_vm5, %v1480_v55, %v1474_v56 }
 0x4b4   : > { %v1478_v57 = vpop.permute.xlu1 %1477 }
 0x4b5   : > { %v1484_v59 = vsel %vm1483_vm6, %v1482_v58, %v1478_v57 }
 0x4b6   : > { %2561 = vmatmul.msk.f32.vlgmr.msra.gmra.mxu2 %vm1117_vm0, %v1484_v59 }
 0x4bc   : > { %v3923_v45 = vpop.permute.xlu1 %1558 }
 0x539   : > { %v1513_v61 = vpop.f32.mrf.mxu2 }
 0x53a   : > { %v1514_v62 = vadd.f32 %v2796_v60, %v1513_v61  ;;  %v1630_v61 = vld [vmem:[%s950_s6] sm:$0xff]  ;;  %s4265_s6 = sshll.u32 %s3724_s2, 5 }
 0x53b   : > { %vm1631_vm11 = vcmp.gt.f32.partialorder %v1630_v61, 0.0 }
 0x53c   : > { %v1516_v63 = vadd.f32 %v1514_v62, %v3776_v4  ;;  %v1594_v4 = vld [vmem:[#allocation10 + $0x8] sm:$0xff] }
 0x53d   : > { %1621 = vmatpush.msrb.mxu0 %v1594_v4 }
 0x53e   : > { %v1519_v0 = vsel %vm1117_vm0, %v1516_v63, 0.0 }
 0x53f   : > { %1520 = vadd.xlane.f32.xlu0 %v1519_v0  ;;  %1622 = vmatpush.msrb.mxu0 %v1593_v8  ;;  %v1632_v0 = vsel %vm1631_vm11, -1e+30, %v3375_v17 }
 0x540   : > { %2563 = vmatmul.msk.f32.vlgmr.msrb.gmra.mxu0 %vm1117_vm0, %v1106_v9 }
 0x548   : > { %2564 = vmatmul.msk.f32.gmra.mxu0 %vm1117_vm0, %v1107_v12 }
 0x5b2   : > { %v1521_v16 = vpop.xlane.xlu0 %1520 }
 0x5b3   : > { %v1529_v18 = vmul.f32 %v3895_v15, %v1521_v16 }
 0x5b5   : > { %v1530_v19 = vsub.f32 %v1516_v63, %v1529_v18 }
 0x5b7   : > { %v1531_v20 = vmul.f32 %v1530_v19, %v1530_v19 }
 0x5b9   : > { %v1532_v21 = vsel %vm1117_vm0, %v1531_v20, 0.0 }
 0x5ba   : > { %1533 = vadd.xlane.f32.xlu2 %v1532_v21 }
 0x5bd   : > { %v1624_v27 = vpop.f32.mrf.mxu0 }
 0x5be   : > { %v3903_v30 = vadd.f32 %v2799_v26, %v1624_v27 }
 0x5c0   : > { %1646 = vrot.lane.b32.xlu0 %v3903_v30, %s3373_s13 }
 0x5c5   : > { %v1627_v32 = vpop.f32.mrf.mxu0 }
 0x5c6   : > { %v3907_v33 = vadd.f32 %v2799_v26, %v1627_v32 }
 0x5c8   : > { %1644 = vrot.lane.b32.xlu1 %v3907_v33, %s3372_s29  ;;  %2565 = vmatpush.xpose.msk.msra.mxu1 %vm1153_vm1, %v3907_v33 }
 0x5cc   : > { %2566 = vmatpush.xpose.msk.msra.mxu1 %vm1153_vm1, %v3903_v30 }
 0x5d0   : > { %1642 = vrot.lane.b32.xlu1 %v3903_v30, %s3372_s29 }
 0x5d8   : > { %1648 = vrot.lane.b32.xlu1 %v3907_v33, %s3373_s13 }
 0x62d   : > { %v1534_v28 = vpop.xlane.xlu2 %1533 }
 0x62e   : > { %v1535_v29 = vmul.f32 %v1534_v28, %v3895_v15 }
 0x630   : > { %v1536_v31 = vadd.f32 1e-05, %v1535_v29 }
 0x632   : > { %2826 = vrsqrt.f32 %v1536_v31  ;;  %vm1543_vm9 = vweird.f32 %v1536_v31  ;;  %v3951_v55 = vpop.permute.xlu0 %1646 }
 0x638   : > { %v2827_v34 = vpop.eup %2826 }
 0x639   : > { %v1538_v35 = vmul.f32 %v2827_v34, %v1536_v31  ;;  %vm1544_vm8 = vweird.f32 %v2827_v34 }
 0x63a   : > { %vm1545_vm10 = vmor %vm1543_vm9, %vm1544_vm8  ;;  %v3932_v48 = vpop.permute.xlu1 %1644 }
 0x63b   : > { %v1539_v36 = vmul.f32 %v2827_v34, %v1538_v35  ;;  %2568 = vmatpush.xpose.msk.msrb.mxu2 %vm1153_vm1, %v3932_v48 }
 0x63d   : > { %v1540_v37 = vmul.f32 0.5, %v1539_v36 }
 0x63f   : > { %v1541_v38 = vsub.f32 1.5, %v1540_v37 }
 0x641   : > { %v1542_v39 = vmul.f32 %v2827_v34, %v1541_v38 }
 0x642   : > { %v3941_v52 = vpop.permute.xlu1 %1642 }
 0x643   : > { %v1546_v41 = vsel %vm1545_vm10, %v2827_v34, %v1542_v39  ;;  %v2774_v53 = vpack.i.bf16 %v3941_v52, %v3932_v48  ;;  %2569 = vmatpush.xpose.msk.msrb.mxu2 %vm1153_vm1, %v3941_v52  ;;  %v2789_v34 = vpack.i.bf16 %v3903_v30, %v3907_v33 }
 0x644   : > { %v1547_v43 = vmul.f32 %v1546_v41, %v1530_v19 }
 0x646   : > { %v1551_v44 = vmul.f32 %v2797_v40, %v1547_v43 }
 0x648   : > { %v1555_v46 = vadd.f32 %v2798_v42, %v1551_v44 }
 0x64a   : > { %v3928_v47 = vmul.f32 %v3923_v45, %v1555_v46  ;;  %v1649_v54 = vpop.permute.xlu1 %1648 }
 0x64b   : > { %2571 = vmatpush.xpose.msk.msrb.mxu3 %vm1153_vm1, %v1649_v54 }
 0x64c   : > { %2562 = vmatmul.msk.f32.vlgmr.msra.gmra.mxu3 %vm1117_vm0, %v3928_v47 }
 0x64f   : > { %2572 = vmatpush.xpose.msk.msrb.mxu3 %vm1153_vm1, %v3951_v55 }
 0x6cf   : > { %v1590_v50 = vpop.f32.mrf.mxu3 }
 0x6d0   : > { %v1591_v51 = vadd.f32 %v2800_v49, %v1590_v50 }
 0x6d2   : > { %1636 = vrot.lane.b32.xlu2 %v1591_v51, %s3373_s13  ;;  %1634 = vrot.lane.b32.xlu1 %v1591_v51, %s3372_s29  ;;  %s4266_s29 = smov 8   ;;  %s4267_s13 = smov 24  }
 0x6d3   : > { %2567 = vmatmul.msk.f32.vlgmr.msra.gmra.mxu1 %vm1153_vm1, %v1591_v51 }
 0x6da   : > { %1652 = vrot.lane.b32.xlu1 %v3907_v33, %s3371_s24 }
 0x6e2   : > { %1650 = vrot.lane.b32.xlu1 %v3903_v30, %s3371_s24 }
 0x6ea   : > { %1638 = vrot.lane.b32.xlu1 %v1591_v51, %s3371_s24  ;;  %s3995_s24 = scalar_lea.vmem [#allocation25], %s4265_s6  ;;  %s2202_s6 = sshll.u32 %s3844_s7, 4  ;;  %s2203_s6 = int_to_ptr.vmem [resolvable:$true] %s2202_s6 }
 0x72c   : > { %v1637_v56 = vpop.permute.xlu2 %1636 }
 0x72d   : > { %2573 = vmatmul.msk.f32.vlgmr.msrb.gmra.mxu3 %vm1153_vm1, %v1637_v56 }
 0x744   : > { %v1635_v57 = vpop.permute.xlu1 %1634 }
 0x745   : > { %2570 = vmatmul.msk.f32.vlgmr.msrb.gmra.mxu2 %vm1153_vm1, %v1635_v57 }
 0x74c   : > { %v1653_v58 = vpop.permute.xlu1 %1652 }
 0x74d   : > { %2574 = vmatpush.xpose.msk.msrb.mxu1 %vm1153_vm1, %v1653_v58  ;;  %v2779_v25 = vpack.i.bf16 %v1653_v58, %v1649_v54 }
 0x750   : > { %v1677_v6 = vpop.f32.mrf.mxu1 }
 0x751   : > { %v1758_v7 = vmul.f32 0.35355338, %v1677_v6 }
 0x753   : > { %v1762_v9 = vadd.f32 %v1758_v7, %v1632_v0 }
 0x754   : > { %v1651_v59 = vpop.permute.xlu1 %1650 }
 0x755   : > { %2575 = vmatpush.xpose.msk.msrb.mxu1 %vm1153_vm1, %v1651_v59  ;;  %v1766_v10 = vsel %vm1481_vm5, %v1762_v9, -inf  ;;  %v2784_v35 = vpack.i.bf16 %v1651_v59, %v3951_v55 }
 0x75c   : > { %v1639_v60 = vpop.permute.xlu1 %1638 }
 0x75d   : > { %2576 = vmatmul.msk.f32.vlgmr.msrb.gmra.mxu1 %vm1153_vm1, %v1639_v60 }
 0x7b0   : > { %v1729_v62 = vpop.f32.mrf.mxu3 }
 0x7b1   : > { %v1760_v63 = vmul.f32 0.35355338, %v1729_v62 }
 0x7b3   : > { %v1764_v1 = vadd.f32 %v1760_v63, %v1632_v0 }
 0x7b5   : > { %v1772_v2 = vsel %vm1481_vm5, %v1764_v1, -inf }
 0x7b6   : > { %1773 = vmax.xlane.f32.xlu2 %v1772_v2 }
 0x7c8   : > { %v1703_v3 = vpop.f32.mrf.mxu2 }
 0x7c9   : > { %v1759_v5 = vmul.f32 0.35355338, %v1703_v3 }
 0x7cb   : > { %v1763_v4 = vadd.f32 %v1759_v5, %v1632_v0 }
 0x7cd   : > { %v1769_v8 = vsel %vm1481_vm5, %v1763_v4, -inf }
 0x7ce   : > { %1770 = vmax.xlane.f32.xlu0 %v1769_v8 }
 0x7d6   : > { %1767 = vmax.xlane.f32.xlu0 %v1766_v10 }
 0x7da   : > { %v1755_v11 = vpop.f32.mrf.mxu1 }
 0x7db   : > { %v1761_v12 = vmul.f32 0.35355338, %v1755_v11 }
 0x7dd   : > { %v1765_v13 = vadd.f32 %v1761_v12, %v1632_v0 }
 0x7df   : > { %v1775_v17 = vsel %vm1481_vm5, %v1765_v13, -inf }
 0x7e0   : > { %1776 = vmax.xlane.f32.xlu1 %v1775_v17 }
 0x829   : > { %v1774_v14 = vpop.xlane.xlu2 %1773 }
 0x82a   : > { %v1780_v16 = vsub.f32 %v1764_v1, %v1774_v14 }
 0x82c   : > { %v1786_v18 = vmul.f32 1.442695, %v1780_v16 }
 0x82e   : > { %2828 = vpow2.f32 %v1786_v18 }
 0x834   : > { %v2829_v19 = vpop.eup %2828 }
 0x835   : > { %v1796_v20 = vsel %vm1481_vm5, %v2829_v19, 0.0 }
 0x836   : > { %1797 = vadd.xlane.f32.xlu1 %v1796_v20 }
 0x841   : > { %v1771_v21 = vpop.xlane.xlu0 %1770 }
 0x842   : > { %v1779_v22 = vsub.f32 %v1763_v4, %v1771_v21 }
 0x844   : > { %v1784_v23 = vmul.f32 1.442695, %v1779_v22 }
 0x846   : > { %2830 = vpow2.f32 %v1784_v23 }
 0x849   : > { %v1768_v36 = vpop.xlane.xlu0 %1767 }
 0x84a   : > { %v1778_v37 = vsub.f32 %v1762_v9, %v1768_v36 }
 0x84c   : > { %v3971_v24 = vpop.eup %2830  ;;  %v1782_v38 = vmul.f32 1.442695, %v1778_v37 }
 0x84d   : > { %v1793_v26 = vsel %vm1481_vm5, %v3971_v24, 0.0 }
 0x84e   : > { %1794 = vadd.xlane.f32.xlu2 %v1793_v26 }
 0x84f   : > { %2780 = vrot.lane.b32.xlu1 %v2779_v25, %s3374_s0 }
 0x853   : > { %v1777_v27 = vpop.xlane.xlu1 %1776 }
 0x854   : > { %v1781_v28 = vsub.f32 %v1765_v13, %v1777_v27 }
 0x856   : > { %v1788_v29 = vmul.f32 1.442695, %v1781_v28 }
 0x858   : > { %2832 = vpow2.f32 %v1788_v29 }
 0x859   : > { %2834 = vpow2.f32 %v1782_v38 }
 0x85e   : > { %v3976_v31 = vpop.eup %2832 }
 0x85f   : > { %v1799_v32 = vsel %vm1481_vm5, %v3976_v31, 0.0  ;;  %v3989_v39 = vpop.eup %2834 }
 0x860   : > { %1800 = vadd.xlane.f32.xlu0 %v1799_v32  ;;  %v1790_v40 = vsel %vm1481_vm5, %v3989_v39, 0.0 }
 0x866   : > { %2775 = vrot.lane.b32.xlu2 %v2774_v53, %s3374_s0 }
 0x86e   : > { %2790 = vrot.lane.b32.xlu2 %v2789_v34, %s3374_s0 }
 0x874   : > { %2785 = vrot.lane.b32.xlu0 %v2784_v35, %s3374_s0  ;;  %s4268_s0 = smov 16  }
 0x89e   : > { %1791 = vadd.xlane.f32.xlu0 %v1790_v40 }
 0x8a9   : > { %v1798_v41 = vpop.xlane.xlu1 %1797 }
 0x8aa   : > { %2836 = vrcp.f32 %v1798_v41  ;;  %v1841_v43 = vand.u32 2147483648, %v1798_v41  ;;  %v1839_v46 = vand.u32 2147483647, %v1798_v41  ;;  %vm1835_vm13 = vweird.f32 %v1798_v41 }
 0x8ac   : > { %v1842_v49 = vor.u32 1.1754944e-38, %v1841_v43  ;;  %vm1840_vm15 = vcmp.eq.f32.partialorder %v1839_v46, 8.507059e+37  ;;  %v1999_v43 = vld [vmem:[#allocation11 + $0x10] sm:$0xff] }
 0x8b0   : > { %v2837_v30 = vpop.eup %2836 }
 0x8b1   : > { %v1831_v33 = vmul.f32 %v2837_v30, %v1798_v41  ;;  %vm1836_vm12 = vweird.f32 %v2837_v30 }
 0x8b2   : > { %vm1837_vm14 = vmor %vm1835_vm13, %vm1836_vm12 }
 0x8b3   : > { %v1832_v42 = vsub.f32 1.0, %v1831_v33 }
 0x8b5   : > { %v1833_v44 = vmul.f32 %v2837_v30, %v1832_v42  ;;  %v2000_v42 = vld [vmem:[#allocation11 + $0x18] sm:$0xff] }
 0x8b7   : > { %v1834_v48 = vadd.f32 %v2837_v30, %v1833_v44  ;;  %v1998_v44 = vld [vmem:[#allocation11 + $0x8] sm:$0xff] }
 0x8b9   : > { %v1838_v50 = vsel %vm1837_vm14, %v2837_v30, %v1834_v48 }
 0x8ba   : > { %v1843_v51 = vsel %vm1840_vm15, %v1842_v49, %v1838_v50 }
 0x8bb   : > { %v1860_v52 = vmul.f32 %v2829_v19, %v1843_v51 }
 0x8bd   : > { %1864 = vst.msk [vmem:[%s3995_s24 + $0x10] sm:$0xff] %vm1481_vm5, %v1860_v52 }
 0x8c1   : > { %v2781_v53 = vpop.permute.xlu1 %2780  ;;  %v1795_v54 = vpop.xlane.xlu2 %1794 }
 0x8c2   : > { %v2783_v55 = vunpack.i.h.bf16 %v2781_v53  ;;  %v2782_v56 = vunpack.i.l.bf16 %v2781_v53  ;;  %2838 = vrcp.f32 %v1795_v54  ;;  %v1827_v62 = vand.u32 2147483648, %v1795_v54 }
 0x8c3   : > { %v1825_v1 = vand.u32 2147483647, %v1795_v54  ;;  %vm1821_vm3 = vweird.f32 %v1795_v54 }
 0x8c4   : > { %1947 = vmatpush.msra.mxu0 %v2782_v56  ;;  %1976 = vmatpush.msra.mxu1 %v2783_v55  ;;  %v1828_v3 = vor.u32 1.1754944e-38, %v1827_v62 }
 0x8c5   : > { %vm1826_vm7 = vcmp.eq.f32.partialorder %v1825_v1, 8.507059e+37  ;;  %v2064_v1 = vld [vmem:[#allocation17 + $0x10] sm:$0xff] }
 0x8c8   : > { %v2839_v57 = vpop.eup %2838 }
 0x8c9   : > { %v1817_v58 = vmul.f32 %v2839_v57, %v1795_v54  ;;  %v2776_v59 = vpop.permute.xlu2 %2775  ;;  %vm1822_vm2 = vweird.f32 %v2839_v57  ;;  %v2801_v54 = vld [vmem:[#allocation13] ss:$0 sm:$0xff] }
 0x8ca   : > { %v2777_v60 = vunpack.i.l.bf16 %v2776_v59  ;;  %v2778_v63 = vunpack.i.h.bf16 %v2776_v59  ;;  %vm1823_vm4 = vmor %vm1821_vm3, %vm1822_vm2  ;;  %vm2106_vm2 = vcmask 523264  }
 0x8cb   : > { %v1818_v61 = vsub.f32 1.0, %v1817_v58 }
 0x8cc   : > { %1918 = vmatpush.msra.mxu3 %v2777_v60 }
 0x8cd   : > { %v1819_v0 = vmul.f32 %v2839_v57, %v1818_v61 }
 0x8ce   : > { %1919 = vmatpush.msra.mxu3 %v2778_v63 }
 0x8cf   : > { %v1820_v2 = vadd.f32 %v2839_v57, %v1819_v0  ;;  %v2065_v0 = vld [vmem:[#allocation17 + $0x18] sm:$0xff] }
 0x8d0   : > { %2085 = vmatpush.msrb.mxu3 %v2065_v0 }
 0x8d1   : > { %v1824_v5 = vsel %vm1823_vm4, %v2839_v57, %v1820_v2  ;;  %v2791_v6 = vpop.permute.xlu2 %2790  ;;  %v2063_v2 = vld [vmem:[#allocation17 + $0x8] sm:$0xff] }
 0x8d2   : > { %v1829_v4 = vsel %vm1826_vm7, %v1828_v3, %v1824_v5  ;;  %v2792_v7 = vunpack.i.l.bf16 %v2791_v6  ;;  %v2793_v10 = vunpack.i.h.bf16 %v2791_v6  ;;  %2086 = vmatpush.msrb.mxu3 %v2064_v1  ;;  %v2062_v3 = vld [vmem:[#allocation17] sm:$0xff] }
 0x8d3   : > { %v1801_v8 = vpop.xlane.xlu0 %1800  ;;  %v1859_v9 = vmul.f32 %v3971_v24, %v1829_v4  ;;  %v2100_v5 = vld [vmem:[%s4156_s21 + $0x30] sm:$0xff] }
 0x8d4   : > { %2840 = vrcp.f32 %v1801_v8  ;;  %1889 = vmatpush.msra.mxu2 %v2792_v7  ;;  %v1855_v17 = vand.u32 2147483648, %v1801_v8  ;;  %v1853_v16 = vand.u32 2147483647, %v1801_v8  ;;  %vm1849_vm9 = vweird.f32 %v1801_v8  ;;  %2087 = vmatpush.msrb.mxu3 %v2063_v2  ;;  %v2099_v7 = vld [vmem:[%s4156_s21 + $0x28] sm:$0xff] }
 0x8d5   : > { %1863 = vst.msk [vmem:[%s3995_s24 + $0x8] sm:$0xff] %vm1481_vm5, %v1859_v9  ;;  %2578 = vmatmul.msk.f32.vlgmr.msra.gmra.mxu3 %vm1481_vm5, %v1859_v9  ;;  %v2098_v9 = vld [vmem:[%s4156_s21 + $0x20] sm:$0xff] }
 0x8d6   : > { %1890 = vmatpush.msra.mxu2 %v2793_v10  ;;  %v1856_v19 = vor.u32 1.1754944e-38, %v1855_v17  ;;  %vm1854_vm11 = vcmp.eq.f32.partialorder %v1853_v16, 8.507059e+37  ;;  %2088 = vmatpush.msrb.mxu3 %v2062_v3  ;;  %v2097_v10 = vld [vmem:[%s4156_s21 + $0x18] sm:$0xff] }
 0x8d8   : > { %2020 = vmatpush.msrb.mxu2 %v2000_v42 }
 0x8da   : > { %v2841_v11 = vpop.eup %2840  ;;  %2021 = vmatpush.msrb.mxu2 %v1999_v43 }
 0x8db   : > { %v1845_v12 = vmul.f32 %v2841_v11, %v1801_v8  ;;  %vm1850_vm8 = vweird.f32 %v2841_v11 }
 0x8dc   : > { %vm1851_vm10 = vmor %vm1849_vm9, %vm1850_vm8  ;;  %2022 = vmatpush.msrb.mxu2 %v1998_v44 }
 0x8dd   : > { %v1846_v13 = vsub.f32 1.0, %v1845_v12 }
 0x8df   : > { %v1847_v14 = vmul.f32 %v2841_v11, %v1846_v13 }
 0x8e1   : > { %v1848_v18 = vadd.f32 %v2841_v11, %v1847_v14 }
 0x8e3   : > { %v1852_v20 = vsel %vm1851_vm10, %v2841_v11, %v1848_v18  ;;  %v2802_v18 = vld [vmem:[#allocation14] ss:$0 sm:$0xff] }
 0x8e4   : > { %v1857_v21 = vsel %vm1854_vm11, %v1856_v19, %v1852_v20  ;;  %v2803_v20 = vld [vmem:[#allocation16] ss:$0 sm:$0xff] }
 0x8e5   : > { %v1861_v22 = vmul.f32 %v3976_v31, %v1857_v21 }
 0x8e6   : > { %v2786_v23 = vpop.permute.xlu0 %2785 }
 0x8e7   : > { %v2788_v24 = vunpack.i.h.bf16 %v2786_v23  ;;  %v2787_v25 = vunpack.i.l.bf16 %v2786_v23  ;;  %1865 = vst.msk [vmem:[%s3995_s24 + $0x18] sm:$0xff] %vm1481_vm5, %v1861_v22 }
 0x8e9   : > { %1948 = vmatpush.msra.mxu0 %v2787_v25  ;;  %1977 = vmatpush.msra.mxu1 %v2788_v24  ;;  %v2096_v25 = vld [vmem:[%s4156_s21 + $0x10] sm:$0xff] }
 0x8ea   : > { %2579 = vmatmul.msk.f32.vlgmr.msra.gmra.mxu0 %vm1481_vm5, %v1860_v52  ;;  %2580 = vmatmul.msk.f32.vlgmr.msra.gmra.mxu1 %vm1481_vm5, %v1861_v22 }
 0x911   : > { %v1792_v26 = vpop.xlane.xlu0 %1791 }
 0x912   : > { %2842 = vrcp.f32 %v1792_v26  ;;  %v1813_v32 = vand.u32 2147483648, %v1792_v26  ;;  %v1811_v31 = vand.u32 2147483647, %v1792_v26  ;;  %vm1807_vm13 = vweird.f32 %v1792_v26 }
 0x914   : > { %v1814_v36 = vor.u32 1.1754944e-38, %v1813_v32  ;;  %vm1812_vm15 = vcmp.eq.f32.partialorder %v1811_v31, 8.507059e+37  ;;  %v2805_v31 = vld [vmem:[%s4269_s9] ss:$0 sm:$0xff] }
 0x918   : > { %v2843_v27 = vpop.eup %2842 }
 0x919   : > { %v1803_v28 = vmul.f32 %v2843_v27, %v1792_v26  ;;  %vm1808_vm12 = vweird.f32 %v2843_v27  ;;  %v2095_v26 = vld [vmem:[%s4156_s21 + $0x8] sm:$0xff] }
 0x91a   : > { %vm1809_vm14 = vmor %vm1807_vm13, %vm1808_vm12 }
 0x91b   : > { %v1804_v29 = vsub.f32 1.0, %v1803_v28  ;;  %v2804_v28 = vld [vmem:[#allocation19] ss:$0 sm:$0xff] }
 0x91d   : > { %v1805_v34 = vmul.f32 %v2843_v27, %v1804_v29 }
 0x91f   : > { %v1806_v35 = vadd.f32 %v2843_v27, %v1805_v34 }
 0x921   : > { %v1810_v37 = vsel %vm1809_vm14, %v2843_v27, %v1806_v35  ;;  %v2094_v27 = vld [vmem:[%s4156_s21] sm:$0xff] }
 0x922   : > { %v1815_v38 = vsel %vm1812_vm15, %v1814_v36, %v1810_v37 }
 0x923   : > { %v1858_v40 = vmul.f32 %v3989_v39, %v1815_v38  ;;  %v1997_v39 = vld [vmem:[#allocation11] sm:$0xff] }
 0x924   : > { %2023 = vmatpush.msrb.mxu2 %v1997_v39 }
 0x925   : > { %1862 = vst.msk [vmem:[%s3995_s24] sm:$0xff] %vm1481_vm5, %v1858_v40  ;;  %2577 = vmatmul.msk.f32.vlgmr.msra.gmra.mxu2 %vm1481_vm5, %v1858_v40 }
 0x958   : > { %v1921_v41 = vpop.f32.mrf.mxu3 }
 0x959   : > { %1983 = vrot.lane.b32.xlu1 %v1921_v41, %s4266_s29 }
 0x967   : > { %v1950_v30 = vpop.f32.mrf.mxu0  ;;  %v1979_v33 = vpop.f32.mrf.mxu1 }
 0x968   : > { %1991 = vrot.lane.b32.xlu1 %v1979_v33, %s4267_s13  ;;  %1987 = vrot.lane.b32.xlu2 %v1950_v30, %s4268_s0  ;;  %s2204_s13 = sshll.u32 %s2201_s27, 4  ;;  %s4272_s0 = sand.u32 1, %s3547_s10   ;;  %s2205_s13 = int_to_ptr.hbm [resolvable:$true] %s2204_s13 }
 0x969   : > { %s4063_s15 = scalar_lea.sflag [#allocation24], %s4272_s0  ;;  %s3222_s30 = sshra.s32 %s2205_s13, 4  ;;  %s3223_s30 = int_to_ptr.hbm [resolvable:$true] %s3222_s30 }
 0x96a   : > { %s3224_s28 = scalar_lea.hbm %s3223_s30, 32  ;;  %p3229_p9 = scmp.lt.s32.totalorder %s3223_s30, %s4271_s26 }
 0x96b   : > { %p3225_p13 = scmp.ne.s32.totalorder %s3223_s30, %s3224_s28  ;;  %p3230_p0 = scmp.lt.s32.totalorder %s3228_s11, %s3224_s28 }
 0x96d   : > { %p3226_p3 = pnand %p3225_p13, %p3617_p4  ;;  %p3231_p2 = por %p3230_p0, %p3229_p9 }
 0x96f   : > { %p3227_p7 = pneg %p3226_p3 }
 0x971   : > { %p3232_p1 = pnand %p3231_p2, %p3227_p7 }
 0x9a8   : > { %v1892_v48 = vpop.f32.mrf.mxu2 }
 0x9c2   : > { %v1988_v50 = vpop.permute.xlu2 %1987 }
 0x9cb   : > { %v1984_v46 = vpop.permute.xlu1 %1983 }
 0x9cc   : > { %v1994_v49 = vsel %vm1153_vm1, %v1892_v48, %v1984_v46 }
 0x9cd   : > { %v1995_v52 = vsel %vm1481_vm5, %v1994_v49, %v1988_v50 }
 0x9da   : > { %v1992_v51 = vpop.permute.xlu1 %1991 }
 0x9db   : > { %v1996_v53 = vsel %vm1483_vm6, %v1995_v52, %v1992_v51 }
 0x9dc   : > { %2581 = vmatmul.msk.f32.vlgmr.msrb.gmra.mxu2 %vm1117_vm0, %v1996_v53 }
 0xa5f   : > { %v2025_v55 = vpop.f32.mrf.mxu2 }
 0xa60   : > { %v2026_v56 = vadd.f32 %v2801_v54, %v2025_v55 }
 0xa62   : > { %v2028_v57 = vadd.f32 %v2026_v56, %v3928_v47  ;;  %v2101_v47 = vld [vmem:[%s4156_s21 + $0x38] sm:$0xff] }
 0xa63   : > { %2118 = vmatpush.msrb.mxu0 %v2101_v47 }
 0xa64   : > { %v2031_v58 = vsel %vm1117_vm0, %v2028_v57, 0.0 }
 0xa65   : > { %2032 = vadd.xlane.f32.xlu2 %v2031_v58  ;;  %2119 = vmatpush.msrb.mxu0 %v2100_v5 }
 0xa67   : > { %2120 = vmatpush.msrb.mxu0 %v2099_v7 }
 0xa69   : > { %2121 = vmatpush.msrb.mxu0 %v2098_v9 }
 0xa6b   : > { %2122 = vmatpush.msrb.mxu0 %v2097_v10 }
 0xa6d   : > { %2123 = vmatpush.msrb.mxu0 %v2096_v25 }
 0xa6f   : > { %2124 = vmatpush.msrb.mxu0 %v2095_v26 }
 0xa71   : > { %2125 = vmatpush.msrb.mxu0 %v2094_v27 }
 0xad8   : > { %v2033_v59 = vpop.xlane.xlu2 %2032 }
 0xad9   : > { %v2034_v60 = vmul.f32 %v2033_v59, %v3895_v15 }
 0xadb   : > { %v2035_v61 = vsub.f32 %v2028_v57, %v2034_v60 }
 0xadd   : > { %v2036_v62 = vmul.f32 %v2035_v61, %v2035_v61 }
 0xadf   : > { %v2037_v63 = vsel %vm1117_vm0, %v2036_v62, 0.0 }
 0xae0   : > { %2038 = vadd.xlane.f32.xlu1 %v2037_v63 }
 0xb53   : > { %v2039_v6 = vpop.xlane.xlu1 %2038 }
 0xb54   : > { %v2040_v4 = vmul.f32 %v2039_v6, %v3895_v15 }
 0xb56   : > { %v2041_v8 = vadd.f32 1e-05, %v2040_v4 }
 0xb58   : > { %2844 = vrsqrt.f32 %v2041_v8  ;;  %vm2048_vm5 = vweird.f32 %v2041_v8 }
 0xb5e   : > { %v2845_v11 = vpop.eup %2844 }
 0xb5f   : > { %v2043_v12 = vmul.f32 %v2845_v11, %v2041_v8  ;;  %vm2049_vm1 = vweird.f32 %v2845_v11 }
 0xb60   : > { %vm2050_vm6 = vmor %vm2048_vm5, %vm2049_vm1 }
 0xb61   : > { %v2044_v13 = vmul.f32 %v2845_v11, %v2043_v12 }
 0xb63   : > { %v2045_v17 = vmul.f32 0.5, %v2044_v13 }
 0xb65   : > { %v2046_v14 = vsub.f32 1.5, %v2045_v17 }
 0xb67   : > { %v2047_v16 = vmul.f32 %v2845_v11, %v2046_v14 }
 0xb69   : > { %v2051_v19 = vsel %vm2050_vm6, %v2845_v11, %v2047_v16 }
 0xb6a   : > { %v2052_v21 = vmul.f32 %v2051_v19, %v2035_v61 }
 0xb6c   : > { %v2056_v22 = vmul.f32 %v2802_v18, %v2052_v21 }
 0xb6e   : > { %v2060_v23 = vadd.f32 %v2803_v20, %v2056_v22 }
 0xb70   : > { %v2061_v24 = vmul.f32 %v2060_v23, %v3923_v45 }
 0xb72   : > { %2582 = vmatmul.msk.f32.vlgmr.msrb.gmra.mxu3 %vm1117_vm0, %v2061_v24 }
 0xbf5   : > { %v2090_v29 = vpop.f32.mrf.mxu3 }
 0xbf6   : > { %v2091_v32 = vadd.f32 %v2804_v28, %v2090_v29 }
 0xbf8   : > { %v2093_v34 = vmax.f32 %v2091_v32, 0.0 }
 0xbfa   : > { %2583 = vmatmul.msk.f32.vlgmr.msrb.gmra.mxu0 %vm2106_vm2, %v2093_v34 }
 0xc77   : > { %v2127_v35 = vpop.f32.mrf.mxu0 }
 0xc78   : > { %v2128_v36 = vadd.f32 %v2805_v31, %v2127_v35 }
 0xc7a   : > { %v2130_v37 = vadd.f32 %v2128_v36, %v2061_v24 }
 0xc7c   : > { %v2133_v38 = vsel %vm1117_vm0, %v2130_v37, 0.0 }
 0xc7d   : > { %2134 = vadd.xlane.f32.xlu0 %v2133_v38 }
 0xcf0   : > { %v2135_v40 = vpop.xlane.xlu0 %2134 }
 0xcf1   : > { %v2136_v41 = vmul.f32 %v2135_v40, %v3895_v15 }
 0xcf3   : > { %v2137_v30 = vsub.f32 %v2130_v37, %v2136_v41 }
 0xcf5   : > { %v2138_v33 = vmul.f32 %v2137_v30, %v2137_v30 }
 0xcf7   : > { %v2139_v42 = vsel %vm1117_vm0, %v2138_v33, 0.0 }
 0xcf8   : > { %2140 = vadd.xlane.f32.xlu0 %v2139_v42 }
 0xcf9   : > { %3235 = shalt.err (!%p3232_p1)
}
 0xcfa   : > { %s3382_s7 = smov 128   ;;  %s4273_s18 = sld [smem:[#allocation65_spill]] }
 0xcfb   : > { %2640 = dma.vmem_to_hbm [thread:$0]  (%p3617_p4), %s2203_s6, 512, %s2205_s13, %s4063_s15, %s3382_s7, %s3382_s7, %s4266_s29  }
 0xcfc   : > { %s2219_s25 = sshll.u32 %s3995_s24, 4  ;;  %s2220_s25 = int_to_ptr.vmem [resolvable:$true] %s2219_s25 }
 0xd00   : > { %s2218_s9 = scalar_lea.hbm %s4273_s18, %s2595_s17  ;;  %s3256_s14 = scalar_lea.hbm %s4273_s18, 64 }
 0xd01   : > { %s2221_s12 = sshll.u32 %s2218_s9, 4  ;;  %s2222_s12 = int_to_ptr.hbm [resolvable:$true] %s2221_s12 }
 0xd02   : > { %s3250_s11 = sshra.s32 %s2222_s12, 4  ;;  %s3251_s11 = int_to_ptr.hbm [resolvable:$true] %s3250_s11 }
 0xd03   : > { %s3252_s30 = scalar_lea.hbm %s3251_s11, 32  ;;  %p3257_p6 = scmp.lt.s32.totalorder %s3251_s11, %s4273_s18 }
 0xd04   : > { %p3253_p12 = scmp.ne.s32.totalorder %s3251_s11, %s3252_s30  ;;  %p3258_p11 = scmp.lt.s32.totalorder %s3256_s14, %s3252_s30 }
 0xd06   : > { %p3254_p8 = pnand %p3253_p12, %p3617_p4  ;;  %p3259_p13 = por %p3258_p11, %p3257_p6 }
 0xd08   : > { %p3255_p10 = pneg %p3254_p8 }
 0xd0a   : > { %p3260_p3 = pnand %p3259_p13, %p3255_p10 }
 0xd0c   : > { %3263 = shalt.err (!%p3260_p3)
}
 0xd0d   : > { %2641 = dma.vmem_to_hbm [thread:$0]  (%p3617_p4), %s2220_s25, 512, %s2222_s12, %s4063_s15, %s3382_s7, %s3382_s7, %s4266_s29   ;;  %v2806_v53 = vld [vmem:[#allocation20] ss:$0 sm:$0xff] }
 0xd0e   : > { %s2587_s14 = sshll.u32 %s3547_s10, 3  ;;  %s4274_s29 = sld [smem:[#allocation62_spill]] }
 0xd0f   : > { %s4275_s7 = sld [smem:[#allocation63_spill]]  ;;  %s1081_s9 = scalar_lea.vmem [#allocation22], %s3727_s1 }
 0xd10   : > { %s2188_s25 = sshll.u32 %s1081_s9, 4  ;;  %s2166_s10 = scalar_lea.sflag [#allocation4], %s3724_s2  ;;  %s2189_s25 = int_to_ptr.vmem [resolvable:$true] %s2188_s25 }
 0xd15   : > { %s4276_s27 = smov %s4275_s7  ;;  %s2186_s0 = scalar_lea.hbm %s4275_s7, %s2587_s14 }
 0xd16   : > { %s2190_s11 = sshll.u32 %s2186_s0, 4  ;;  %s3284_s1 = scalar_lea.hbm %s4276_s27, 16  ;;  %s2191_s11 = int_to_ptr.hbm [resolvable:$true] %s2190_s11 }
 0xd17   : > { %s3278_s30 = sshra.s32 %s2191_s11, 4  ;;  %s3279_s30 = int_to_ptr.hbm [resolvable:$true] %s3278_s30 }
 0xd18   : > { %s3280_s28 = scalar_lea.hbm %s3279_s30, 8  ;;  %p3285_p2 = scmp.lt.s32.totalorder %s3279_s30, %s4276_s27 }
 0xd19   : > { %p3281_p7 = scmp.ne.s32.totalorder %s3279_s30, %s3280_s28  ;;  %p3286_p1 = scmp.lt.s32.totalorder %s3284_s1, %s3280_s28 }
 0xd1b   : > { %p3282_p9 = pnand %p3281_p7, %p3617_p4  ;;  %p3287_p12 = por %p3286_p1, %p3285_p2 }
 0xd1d   : > { %p3283_p0 = pneg %p3282_p9 }
 0xd1f   : > { %p3288_p8 = pnand %p3287_p12, %p3283_p0 }
 0xd6b   : > { %v2141_v43 = vpop.xlane.xlu0 %2140 }
 0xd6c   : > { %v2142_v44 = vmul.f32 %v2141_v43, %v3895_v15  ;;  %v2807_v15 = vld [vmem:[%s4274_s29] ss:$0 sm:$0xff] }
 0xd6e   : > { %v2143_v39 = vadd.f32 1e-05, %v2142_v44 }
 0xd70   : > { %2846 = vrsqrt.f32 %v2143_v39  ;;  %vm2150_vm4 = vweird.f32 %v2143_v39 }
 0xd76   : > { %v2847_v46 = vpop.eup %2846 }
 0xd77   : > { %v2145_v48 = vmul.f32 %v2847_v46, %v2143_v39  ;;  %vm2151_vm3 = vweird.f32 %v2847_v46 }
 0xd78   : > { %vm2152_vm7 = vmor %vm2150_vm4, %vm2151_vm3 }
 0xd79   : > { %v2146_v49 = vmul.f32 %v2847_v46, %v2145_v48 }
 0xd7b   : > { %v2147_v50 = vmul.f32 0.5, %v2146_v49 }
 0xd7d   : > { %v2148_v51 = vsub.f32 1.5, %v2147_v50 }
 0xd7f   : > { %v2149_v52 = vmul.f32 %v2847_v46, %v2148_v51 }
 0xd81   : > { %v2153_v54 = vsel %vm2152_vm7, %v2847_v46, %v2149_v52 }
 0xd82   : > { %v2154_v55 = vmul.f32 %v2153_v54, %v2137_v30 }
 0xd84   : > { %v2158_v56 = vmul.f32 %v2806_v53, %v2154_v55 }
 0xd86   : > { %v2162_v57 = vadd.f32 %v2807_v15, %v2158_v56 }
 0xd88   : > { %v2163_v58 = vmul.f32 %v2162_v57, %v3923_v45 }
 0xd8a   : > { %2164 = vst.msk [vmem:[%s1081_s9] sm:$0xff] %vm1117_vm0, %v2163_v58 }
 0xd8b   : > { %3291 = shalt.err (!%p3288_p8)
}
 0xd8c   : > { %2639 = dma.vmem_to_hbm [thread:$0]  (%p3617_p4), %s2189_s25, 128, %s2191_s11, %s2166_s10  }
 0xd8d PF: > { %s4277_s2 = sld [smem:[#allocation35_spill]] }
 0xd8e   : > { %s4279_s24 = sld [smem:[#allocation36_spill]] }
 0xd93   : > { %s2236_s29 = sand.u32 1, %s4277_s2  }
 0xd94   : > { %p4280_p10 = scmp.ge.s32.totalorder %s4279_s24, 2  ;;  %s2237_s17 = scalar_lea.sflag [#allocation4], %s2236_s29 }
 0xd96   : > { %p2684_p6 = pnand %p4280_p10, %p3621_p5 }
 0xd98   : > { %p2685_p11 = pneg %p2684_p6 }
 0xd9a   : > { %3337 = dma.done.wait (%p2685_p11), %s2237_s17, 128  }
 0xd9b   : > { %3339 = vsyncadd (%p2685_p11), %s2237_s17, 4294967168  ;;  %s4281_s15 = sadd.s32 4294967294, %s4279_s24  }
 0xd9c   : > { %s2246_s7 = sand.u32 1, %s4281_s15  }
 0xd9d   : > { %s2247_s0 = scalar_lea.sflag [#allocation24], %s2246_s7 }
 0xd9e   : > { %3341 = dma.done.wait (%p2685_p11), %s2247_s0, 1024  }
 0xd9f   : > { %3343 = vsyncadd (%p2685_p11), %s2247_s0, 4294966272  ;;  %s4282_s30 = sld [smem:[#allocation37_spill]]  ;;  %s4284_s7 = smov %s3350_s4 }
 0xda0   : > { %s4283_s3 = sld [smem:[#allocation38_spill]]  ;;  %s4285_s4 = smov %s3354_s8 }
 0xda5   : > { %p52_p4 = scmp.ge.s32.totalorder %s4282_s30, 4  }
 0xda6   : > { %s4286_s8 = smov %s4283_s3 }
 0xda7   :  { %54 = sbr.rel (!%p52_p4) target bundleno = 40 (0x28), region = 263 }
 0xdac   :  { %2263 = vsyncpa [#allocation3], 1 }
 0xdad   :  { %2265 = vsyncpa [#allocation3 + $0x1], 1 }
 0xdae   :  { %2266 = vsyncpa [#allocation6], 1 }
 0xdaf   :  { %2268 = vsyncpa [#allocation6 + $0x1], 1 }
 0xdb0   :  { %2269 = vsyncpa [#allocation9], 1 }
 0xdb1   :  { %2270 = vsyncpa [#allocation12], 1 }
 0xdb2   :  { %2271 = vsyncpa [#allocation15], 1 }
 0xdb3   :  { %2272 = vsyncpa [#allocation18], 1 }
 0xdb4   :  { %2273 = vsyncpa [#allocation21], 1 }
 0xdb5   :  { %2274 = vsyncpa [#allocation4], 1 }
 0xdb6   :  { %2276 = vsyncpa [#allocation4 + $0x1], 1 }
 0xdb7   :  { %2277 = vsyncpa [#allocation24], 1 }
 0xdb8   :  { %2279 = vsyncpa [#allocation24 + $0x1], 1 }

</bundles_post_ra>
